<compile_context>
chip_gen: v5e
topology: v5e:2x2
jax: 0.10.0
libtpu: 0.0.40
codegen_flags: <defaults>
</compile_context>

<pallas_src>
import functools

import jax
import jax.numpy as jnp
from jax.experimental import pallas as pl
from jax.experimental.pallas import tpu as pltpu

MXU_DTYPE = jnp.bfloat16  # MXU input dtype; accumulation / state stay float32


def _round_up(x, m):
    return (x + m - 1) // m * m


# ---------------------------------------------------------------------------
# Row-tiled dense kernel:  out = x @ W + b      (used for the hoisted
# x @ U_x + b_x  and  o_s @ U_g + b_g projections)
# ---------------------------------------------------------------------------
def dense_kernel(x_ref, w_ref, b_ref, o_ref):
    o_ref[...] = (
        jnp.dot(x_ref[...].astype(MXU_DTYPE), w_ref[...],
                preferred_element_type=jnp.float32)
        + b_ref[...])


def dense(x2d, w, b, *, tile_m=512):
    """x2d: (M, K) f32, w: (K, N) bf16, b: (N,) f32 -> (M, N) f32."""
    M, K = x2d.shape
    N = w.shape[1]
    tm = min(tile_m, _round_up(M, 8))
    Mp = _round_up(M, tm)
    if Mp != M:
        x2d = jnp.pad(x2d, ((0, Mp - M), (0, 0)))
    out = pl.pallas_call(
        dense_kernel,
        out_shape=jax.ShapeDtypeStruct((Mp, N), jnp.float32),
        grid_spec=pltpu.PrefetchScalarGridSpec(
            num_scalar_prefetch=0,
            grid=(Mp // tm,),
            in_specs=[
                pl.BlockSpec((tm, K), lambda i: (i, 0)),
                pl.BlockSpec((K, N), lambda i: (0, 0)),
                pl.BlockSpec((1, N), lambda i: (0, 0)),
            ],
            out_specs=pl.BlockSpec((tm, N), lambda i: (i, 0)),
        ),
        compiler_params=pltpu.CompilerParams(
            dimension_semantics=("parallel",)),
    )(x2d, w, b.reshape(1, -1))
    return out[:M] if Mp != M else out


# ---------------------------------------------------------------------------
# GLSTM recurrence kernel.  Grid = (batch_tiles, T); one grid step == one
# timestep of one batch tile.  Only the recurrent matmul h_t @ [V_x | V_g]
# lives here -- the x / o_s projections (with biases folded in) arrive as
# precomputed, lane-padded gate pre-activations gx / gg.
# ---------------------------------------------------------------------------
def glstm_rec_kernel(gx_ref, gg_ref, v_ref, out_ref, ht_ref, ct_ref, *, hp):
    t = pl.program_id(1)

    # init_stat is None in the PyTorch forward -> zero state at t == 0
    @pl.when(t == 0)
    def _():
        ht_ref[...] = jnp.zeros_like(ht_ref)
        ct_ref[...] = jnp.zeros_like(ct_ref)

    ht = ht_ref[...]                                     # (BT, HP) f32
    ct = ct_ref[...]                                     # (BT, HP) f32

    # Single fused recurrent matmul: (BT, HP) @ (HP, 6*HP) -> (BT, 6*HP)
    rec = jnp.dot(ht.astype(v_ref.dtype), v_ref[...],
                  preferred_element_type=jnp.float32)

    # Wide-slab transcendentals (all 6 gates are sigmoids), then 128-aligned
    # lane slices -- no sub-128 lane shuffles in the serial loop.
    sig_x = jax.nn.sigmoid(gx_ref[...] + rec[:, :4 * hp])   # (BT, 4*HP)
    sig_g = jax.nn.sigmoid(gg_ref[...] + rec[:, 4 * hp:])   # (BT, 2*HP)

    ft = sig_x[:, 0 * hp:1 * hp]
    it = sig_x[:, 1 * hp:2 * hp]
    ot = sig_x[:, 2 * hp:3 * hp]
    ut = sig_x[:, 3 * hp:4 * hp]
    gov_f = sig_g[:, 0 * hp:1 * hp]
    gov_u = sig_g[:, 1 * hp:2 * hp]

    ct_new = gov_f * ft * ct + gov_u * it * ut
    ht_new = ot * jnp.tanh(ct_new)

    ct_ref[...] = ct_new
    ht_ref[...] = ht_new
    out_ref[...] = ht_new


def glstm_forward_tm(x_tm, os_tm, params, bn_tile):
    """One Glstm block in time-major padded layout.

    x_tm:  (T, BNP, Din_pad) f32 -- only the first `input_dim` lanes are real.
    os_tm: (T, BNP, Dg)      f32
    Returns (T, BNP, HP) f32 hidden sequence (real lanes = first H).
    """
    T, BNP, Dx_pad = x_tm.shape
    Dg = os_tm.shape[-1]
    Ux, Vx, bx, Ug, Vg, bg = params
    in_dim = Ux.shape[0]
    H = Vx.shape[0]
    HP = _round_up(H, 128)

    assert in_dim <= Dx_pad, (in_dim, Dx_pad)
    assert Ug.shape[0] == Dg, (
        "o_s feature dim must equal this block's input_dim "
        f"(got o_s dim {Dg}, U_g rows {Ug.shape[0]})")

    # --- zero-pad parameters into the lane-aligned gate layout ---------------
    Ux_p = (jnp.zeros((Dx_pad, 4, HP), jnp.float32)
            .at[:in_dim, :, :H].set(Ux.reshape(in_dim, 4, H))
            .reshape(Dx_pad, 4 * HP).astype(MXU_DTYPE))
    bx_p = (jnp.zeros((4, HP), jnp.float32)
            .at[:, :H].set(bx.reshape(4, H)).reshape(4 * HP))
    Ug_p = (jnp.zeros((Dg, 2, HP), jnp.float32)
            .at[:, :, :H].set(Ug.reshape(Dg, 2, H))
            .reshape(Dg, 2 * HP).astype(MXU_DTYPE))
    bg_p = (jnp.zeros((2, HP), jnp.float32)
            .at[:, :H].set(bg.reshape(2, H)).reshape(2 * HP))
    V_p = jnp.zeros((HP, 6, HP), jnp.float32)
    V_p = V_p.at[:H, :4, :H].set(Vx.reshape(H, 4, H))
    V_p = V_p.at[:H, 4:, :H].set(Vg.reshape(H, 2, H))
    V_p = V_p.reshape(HP, 6 * HP).astype(MXU_DTYPE)

    # --- hoisted input projections: one MXU-efficient batched matmul each ----
    M = T * BNP
    gx = dense(x_tm.reshape(M, Dx_pad), Ux_p, bx_p).reshape(T, BNP, 4 * HP)
    gg = dense(os_tm.reshape(M, Dg), Ug_p, bg_p).reshape(T, BNP, 2 * HP)

    # --- serial recurrence over T, parallel over batch tiles -----------------
    NB = BNP // bn_tile
    out = pl.pallas_call(
        functools.partial(glstm_rec_kernel, hp=HP),
        out_shape=jax.ShapeDtypeStruct((T, BNP, HP), jnp.float32),
        grid_spec=pltpu.PrefetchScalarGridSpec(
            num_scalar_prefetch=0,
            grid=(NB, T),
            in_specs=[
                pl.BlockSpec((None, bn_tile, 4 * HP), lambda b, t: (t, b, 0)),
                pl.BlockSpec((None, bn_tile, 2 * HP), lambda b, t: (t, b, 0)),
                pl.BlockSpec((HP, 6 * HP), lambda b, t: (0, 0)),
            ],
            out_specs=pl.BlockSpec((None, bn_tile, HP), lambda b, t: (t, b, 0)),
            scratch_shapes=[
                pltpu.VMEM((bn_tile, HP), jnp.float32),   # ht
                pltpu.VMEM((bn_tile, HP), jnp.float32),   # ct
            ],
        ),
        compiler_params=pltpu.CompilerParams(
            dimension_semantics=("parallel", "arbitrary"),
            vmem_limit_bytes=48 * 1024 * 1024),
    )(gx, gg, V_p)
    return out


# ---------------------------------------------------------------------------
# FeedForward: relu(x @ W1 + b1) @ W2 + b2, fused, row-tiled, lane-padded out.
# ---------------------------------------------------------------------------
def ff_kernel(x_ref, w1_ref, b1_ref, w2_ref, b2_ref, o_ref):
    h = (jnp.dot(x_ref[...].astype(MXU_DTYPE), w1_ref[...],
                 preferred_element_type=jnp.float32) + b1_ref[...])
    h = jnp.maximum(h, 0.0)
    # TODO(synk): nn.Dropout(0.1) treated as identity (inference semantics).
    o_ref[...] = (jnp.dot(h.astype(MXU_DTYPE), w2_ref[...],
                          preferred_element_type=jnp.float32) + b2_ref[...])


def feedforward_tm(x2d, params, *, tile_m=512):
    """x2d: (M, Dp) f32 (real lanes = first W1.shape[0]) -> (M, out_dim) f32."""
    W1, b1, W2, b2 = params
    M, Dp = x2d.shape
    d_model, d_ff = W1.shape
    out_dim = W2.shape[1]
    assert d_model <= Dp, (d_model, Dp)
    FFP = _round_up(d_ff, 128)
    OUTP = _round_up(out_dim, 128)

    W1_p = (jnp.zeros((Dp, FFP), jnp.float32)
            .at[:d_model, :d_ff].set(W1).astype(MXU_DTYPE))
    b1_p = jnp.zeros((1, FFP), jnp.float32).at[0, :d_ff].set(b1)
    W2_p = (jnp.zeros((FFP, OUTP), jnp.float32)
            .at[:d_ff, :out_dim].set(W2).astype(MXU_DTYPE))
    b2_p = jnp.zeros((1, OUTP), jnp.float32).at[0, :out_dim].set(b2)

    tm = min(tile_m, _round_up(M, 8))
    Mp = _round_up(M, tm)
    if Mp != M:
        x2d = jnp.pad(x2d, ((0, Mp - M), (0, 0)))

    out = pl.pallas_call(
        ff_kernel,
        out_shape=jax.ShapeDtypeStruct((Mp, OUTP), jnp.float32),
        grid_spec=pltpu.PrefetchScalarGridSpec(
            num_scalar_prefetch=0,
            grid=(Mp // tm,),
            in_specs=[
                pl.BlockSpec((tm, Dp), lambda i: (i, 0)),
                pl.BlockSpec((Dp, FFP), lambda i: (0, 0)),
                pl.BlockSpec((1, FFP), lambda i: (0, 0)),
                pl.BlockSpec((FFP, OUTP), lambda i: (0, 0)),
                pl.BlockSpec((1, OUTP), lambda i: (0, 0)),
            ],
            out_specs=pl.BlockSpec((tm, OUTP), lambda i: (i, 0)),
        ),
        compiler_params=pltpu.CompilerParams(
            dimension_semantics=("parallel",)),
    )(x2d, W1_p, b1_p, W2_p, b2_p)
    return out[:M, :out_dim]


# ---------------------------------------------------------------------------
# Parameter init (deterministic, in-script)
# ---------------------------------------------------------------------------
def xavier_uniform(key, shape):
    fan_in, fan_out = shape[0], shape[1]
    limit = (6.0 / (fan_in + fan_out)) ** 0.5
    return jax.random.uniform(key, shape, jnp.float32, -limit, limit)


def init_glstm_params(key, input_dim, hidden_dim, bs=1e-9):
    k1, k2, k3, k4 = jax.random.split(key, 4)
    Ux = xavier_uniform(k1, (input_dim, 4 * hidden_dim))
    Vx = xavier_uniform(k2, (hidden_dim, 4 * hidden_dim))
    bx = jnp.full((4 * hidden_dim,), bs, jnp.float32)
    Ug = xavier_uniform(k3, (input_dim, 2 * hidden_dim))
    Vg = xavier_uniform(k4, (hidden_dim, 2 * hidden_dim))
    bg = jnp.full((2 * hidden_dim,), bs, jnp.float32)
    return (Ux, Vx, bx, Ug, Vg, bg)


def init_linear_params(key, in_dim, out_dim):
    kw, kb = jax.random.split(key)
    bound = 1.0 / (in_dim ** 0.5)
    W = jax.random.uniform(kw, (in_dim, out_dim), jnp.float32, -bound, bound)
    b = jax.random.uniform(kb, (out_dim,), jnp.float32, -bound, bound)
    return W, b


def init_muti_glstm_params(key, dim_blocks, output_dim, d_ff=64):
    keys = jax.random.split(key, len(dim_blocks) + 2)
    lstm_params = [
        init_glstm_params(keys[i], blk['input_dim'], blk['output_dim'])
        for i, blk in enumerate(dim_blocks)
    ]
    d_model = dim_blocks[-1]['output_dim']
    W1, b1 = init_linear_params(keys[-2], d_model, d_ff)
    W2, b2 = init_linear_params(keys[-1], d_ff, output_dim)
    return lstm_params, (W1, b1, W2, b2)


# ---------------------------------------------------------------------------
# Full Muti_glstm forward
# ---------------------------------------------------------------------------
def muti_glstm_forward(x, o_s, dim_blocks, lstm_params, ff_params):
    """x: (B, T, N, D), o_s: (B, T, N, Dg) -> (B, T, N, output_dim)."""
    B, T, N, D = x.shape
    Dg = o_s.shape[-1]
    BN = B * N
    bn_tile = min(_round_up(BN, 8), 256)
    BNP = _round_up(BN, bn_tile)

    # time-major, flatten (batch, nodes), pad rows once -- no per-block
    # transposes after this point.
    x_tm = jnp.transpose(x, (1, 0, 2, 3)).reshape(T, BN, D)
    os_tm = jnp.transpose(o_s, (1, 0, 2, 3)).reshape(T, BN, Dg)
    if BNP != BN:
        x_tm = jnp.pad(x_tm, ((0, 0), (0, BNP - BN), (0, 0)))
        os_tm = jnp.pad(os_tm, ((0, 0), (0, BNP - BN), (0, 0)))

    hidden = x_tm
    feat_real = D
    for blk, params in zip(dim_blocks, lstm_params):
        assert blk['input_dim'] == feat_real, (blk, feat_real)
        assert blk['input_dim'] == Dg, (
            "Muti_glstm feeds the same o_s to every block, so every block's "
            "input_dim must equal o_s's feature dim")
        hidden = glstm_forward_tm(hidden, os_tm, params, bn_tile)
        feat_real = blk['output_dim']

    # FeedForward on the flattened time-major slab (lane-padded input handled
    # by zero rows in W1).
    out2d = feedforward_tm(hidden.reshape(T * BNP, hidden.shape[-1]), ff_params)
    out_dim = out2d.shape[-1]
    out = out2d.reshape(T, BNP, out_dim)[:, :BN, :]
    return out.reshape(T, B, N, out_dim).transpose(1, 0, 2, 3)


if __name__ == "__main__":
    key = jax.random.PRNGKey(0)
    kx, ko, kp = jax.random.split(key, 3)

    # Small shapes consistent with the module.  Muti_glstm feeds the SAME o_s
    # to every block, so every block's input_dim equals o_s's feature dim.
    B, T, N, D = 2, 8, 4, 4
    dim_blocks = [
        {'input_dim': D, 'output_dim': D},    # Glstm 1
        {'input_dim': D, 'output_dim': 32},   # Glstm 2
    ]
    output_dim = 16                            # FeedForward hidden_dim

    x = jax.random.normal(kx, (B, T, N, D), jnp.float32)
    o_s = jax.random.normal(ko, (B, T, N, D), jnp.float32)

    lstm_params, ff_params = init_muti_glstm_params(kp, dim_blocks, output_dim)

    @jax.jit
    def run(x, o_s, lstm_params, ff_params):
        return muti_glstm_forward(x, o_s, dim_blocks, lstm_params, ff_params)

    out = jax.block_until_ready(run(x, o_s, lstm_params, ff_params))

    assert out.shape == (B, T, N, output_dim), out.shape
    assert bool(jnp.all(jnp.isfinite(out)))
    print("KERNEL_OK")
</pallas_src>

<mosaic_0001>
module attributes {stable_mosaic.version = 11 : i64} {
  func.func @dense_kernel(%arg0: i32, %arg1: memref<64x4xf32, #tpu.memory_space<vmem>>, %arg2: memref<4x256xbf16, #tpu.memory_space<vmem>>, %arg3: memref<1x256xf32, #tpu.memory_space<vmem>>, %arg4: memref<64x256xf32, #tpu.memory_space<vmem>>) attributes {dimension_semantics = [#tpu.dimension_semantics<parallel>], iteration_bounds = array<i64: 1>, scalar_prefetch = 0 : i64, scratch_operands = 0 : i64, tpu.core_type = #tpu.core_type<tc>, window_params = [{transform_indices = @transform_0, window_bounds = array<i64: 64, 4>}, {pipeline_mode = #tpu.pipeline_mode<synchronous>, transform_indices = @transform_1, window_bounds = array<i64: 4, 256>}, {pipeline_mode = #tpu.pipeline_mode<synchronous>, transform_indices = @transform_2, window_bounds = array<i64: 1, 256>}, {transform_indices = @transform_3, window_bounds = array<i64: 64, 256>}]} {
    %c0 = arith.constant 0 : index
    %c0_0 = arith.constant 0 : index
    %0 = vector.load %arg1[%c0, %c0_0] : memref<64x4xf32, #tpu.memory_space<vmem>>, vector<64x4xf32>
    %1 = arith.truncf %0 : vector<64x4xf32> to vector<64x4xbf16>
    %c0_1 = arith.constant 0 : index
    %c0_2 = arith.constant 0 : index
    %2 = vector.load %arg2[%c0_1, %c0_2] : memref<4x256xbf16, #tpu.memory_space<vmem>>, vector<4x256xbf16>
    %cst = arith.constant dense<0.000000e+00> : vector<64x256xf32>
    %3 = tpu.matmul %1, %2, %cst {dimension_numbers = #tpu.dot_dimension_numbers<[1], [0], [0], [1], [0, 0, 1, 1], [], []>} : vector<64x4xbf16>, vector<4x256xbf16>, vector<64x256xf32> -> vector<64x256xf32>
    %c0_3 = arith.constant 0 : index
    %c0_4 = arith.constant 0 : index
    %4 = vector.load %arg3[%c0_3, %c0_4] : memref<1x256xf32, #tpu.memory_space<vmem>>, vector<1x256xf32>
    %5 = vector.broadcast %4 : vector<1x256xf32> to vector<64x256xf32>
    %6 = arith.addf %3, %5 : vector<64x256xf32>
    %c0_5 = arith.constant 0 : index
    %c0_6 = arith.constant 0 : index
    %7 = vector.load %arg4[%c0_5, %c0_6] : memref<64x256xf32, #tpu.memory_space<vmem>>, vector<64x256xf32>
    tpu.vector_store %arg4[%c0_5, %c0_6], %6 {strides = array<i32>} : memref<64x256xf32, #tpu.memory_space<vmem>>, vector<64x256xf32>,
    return
  }
  func.func @transform_0(%arg0: i32) -> (i32, i32) {
    %c0_i32 = arith.constant 0 : i32
    %c0_i32_0 = arith.constant 0 : i32
    return %arg0, %c0_i32 : i32, i32
  }
  func.func @transform_1(%arg0: i32) -> (i32, i32) {
    %c0_i32 = arith.constant 0 : i32
    %c0_i32_0 = arith.constant 0 : i32
    %c0_i32_1 = arith.constant 0 : i32
    return %c0_i32, %c0_i32_0 : i32, i32
  }
  func.func @transform_2(%arg0: i32) -> (i32, i32) {
    %c0_i32 = arith.constant 0 : i32
    %c0_i32_0 = arith.constant 0 : i32
    %c0_i32_1 = arith.constant 0 : i32
    return %c0_i32, %c0_i32_0 : i32, i32
  }
  func.func @transform_3(%arg0: i32) -> (i32, i32) {
    %c0_i32 = arith.constant 0 : i32
    %c0_i32_0 = arith.constant 0 : i32
    return %arg0, %c0_i32 : i32, i32
  }
}

module attributes {stable_mosaic.version = 11 : i64} {
  func.func @dense_kernel(%arg0: i32, %arg1: memref<64x4xf32, #tpu.memory_space<vmem>>, %arg2: memref<4x512xbf16, #tpu.memory_space<vmem>>, %arg3: memref<1x512xf32, #tpu.memory_space<vmem>>, %arg4: memref<64x512xf32, #tpu.memory_space<vmem>>) attributes {dimension_semantics = [#tpu.dimension_semantics<parallel>], iteration_bounds = array<i64: 1>, scalar_prefetch = 0 : i64, scratch_operands = 0 : i64, tpu.core_type = #tpu.core_type<tc>, window_params = [{transform_indices = @transform_0, window_bounds = array<i64: 64, 4>}, {pipeline_mode = #tpu.pipeline_mode<synchronous>, transform_indices = @transform_1, window_bounds = array<i64: 4, 512>}, {pipeline_mode = #tpu.pipeline_mode<synchronous>, transform_indices = @transform_2, window_bounds = array<i64: 1, 512>}, {transform_indices = @transform_3, window_bounds = array<i64: 64, 512>}]} {
    %c0 = arith.constant 0 : index
    %c0_0 = arith.constant 0 : index
    %0 = vector.load %arg1[%c0, %c0_0] : memref<64x4xf32, #tpu.memory_space<vmem>>, vector<64x4xf32>
    %1 = arith.truncf %0 : vector<64x4xf32> to vector<64x4xbf16>
    %c0_1 = arith.constant 0 : index
    %c0_2 = arith.constant 0 : index
    %2 = vector.load %arg2[%c0_1, %c0_2] : memref<4x512xbf16, #tpu.memory_space<vmem>>, vector<4x512xbf16>
    %cst = arith.constant dense<0.000000e+00> : vector<64x512xf32>
    %3 = tpu.matmul %1, %2, %cst {dimension_numbers = #tpu.dot_dimension_numbers<[1], [0], [0], [1], [0, 0, 1, 1], [], []>} : vector<64x4xbf16>, vector<4x512xbf16>, vector<64x512xf32> -> vector<64x512xf32>
    %c0_3 = arith.constant 0 : index
    %c0_4 = arith.constant 0 : index
    %4 = vector.load %arg3[%c0_3, %c0_4] : memref<1x512xf32, #tpu.memory_space<vmem>>, vector<1x512xf32>
    %5 = vector.broadcast %4 : vector<1x512xf32> to vector<64x512xf32>
    %6 = arith.addf %3, %5 : vector<64x512xf32>
    %c0_5 = arith.constant 0 : index
    %c0_6 = arith.constant 0 : index
    %7 = vector.load %arg4[%c0_5, %c0_6] : memref<64x512xf32, #tpu.memory_space<vmem>>, vector<64x512xf32>
    tpu.vector_store %arg4[%c0_5, %c0_6], %6 {strides = array<i32>} : memref<64x512xf32, #tpu.memory_space<vmem>>, vector<64x512xf32>,
    return
  }
  func.func @transform_0(%arg0: i32) -> (i32, i32) {
    %c0_i32 = arith.constant 0 : i32
    %c0_i32_0 = arith.constant 0 : i32
    return %arg0, %c0_i32 : i32, i32
  }
  func.func @transform_1(%arg0: i32) -> (i32, i32) {
    %c0_i32 = arith.constant 0 : i32
    %c0_i32_0 = arith.constant 0 : i32
    %c0_i32_1 = arith.constant 0 : i32
    return %c0_i32, %c0_i32_0 : i32, i32
  }
  func.func @transform_2(%arg0: i32) -> (i32, i32) {
    %c0_i32 = arith.constant 0 : i32
    %c0_i32_0 = arith.constant 0 : i32
    %c0_i32_1 = arith.constant 0 : i32
    return %c0_i32, %c0_i32_0 : i32, i32
  }
  func.func @transform_3(%arg0: i32) -> (i32, i32) {
    %c0_i32 = arith.constant 0 : i32
    %c0_i32_0 = arith.constant 0 : i32
    return %arg0, %c0_i32 : i32, i32
  }
}

module attributes {stable_mosaic.version = 11 : i64} {
  func.func @glstm_rec_kernel(%arg0: i32, %arg1: i32, %arg2: memref<1x8x512xf32, #tpu.memory_space<vmem>>, %arg3: memref<1x8x256xf32, #tpu.memory_space<vmem>>, %arg4: memref<128x768xbf16, #tpu.memory_space<vmem>>, %arg5: memref<1x8x128xf32, #tpu.memory_space<vmem>>, %arg6: memref<8x128xf32, #tpu.memory_space<vmem>>, %arg7: memref<8x128xf32, #tpu.memory_space<vmem>>) attributes {dimension_semantics = [#tpu.dimension_semantics<parallel>, #tpu.dimension_semantics<arbitrary>], iteration_bounds = array<i64: 1, 8>, scalar_prefetch = 0 : i64, scratch_operands = 2 : i64, tpu.core_type = #tpu.core_type<tc>, window_params = [{transform_indices = @transform_0, window_bounds = array<i64: 1, 8, 512>}, {transform_indices = @transform_1, window_bounds = array<i64: 1, 8, 256>}, {pipeline_mode = #tpu.pipeline_mode<synchronous>, transform_indices = @transform_2, window_bounds = array<i64: 128, 768>}, {transform_indices = @transform_3, window_bounds = array<i64: 1, 8, 128>}]} {
    %c0_i32 = arith.constant 0 : i32
    %0 = arith.cmpi eq, %arg1, %c0_i32 : i32
    %1 = arith.extui %0 : i1 to i32
    %c0_i32_0 = arith.constant 0 : i32
    %2 = arith.cmpi ne, %1, %c0_i32_0 : i32
    scf.if %2 {
      %cst_21 = arith.constant 0.000000e+00 : f32
      %44 = vector.broadcast %cst_21 : f32 to vector<8x128xf32>
      %c0_22 = arith.constant 0 : index
      %c0_23 = arith.constant 0 : index
      %45 = vector.load %arg6[%c0_22, %c0_23] : memref<8x128xf32, #tpu.memory_space<vmem>>, vector<8x128xf32>
      tpu.vector_store %arg6[%c0_22, %c0_23], %44 {strides = array<i32>} : memref<8x128xf32, #tpu.memory_space<vmem>>, vector<8x128xf32>,
      %cst_24 = arith.constant 0.000000e+00 : f32
      %46 = vector.broadcast %cst_24 : f32 to vector<8x128xf32>
      %c0_25 = arith.constant 0 : index
      %c0_26 = arith.constant 0 : index
      %47 = vector.load %arg7[%c0_25, %c0_26] : memref<8x128xf32, #tpu.memory_space<vmem>>, vector<8x128xf32>
      tpu.vector_store %arg7[%c0_25, %c0_26], %46 {strides = array<i32>} : memref<8x128xf32, #tpu.memory_space<vmem>>, vector<8x128xf32>,
    } else {
    }
    %c0 = arith.constant 0 : index
    %c0_1 = arith.constant 0 : index
    %3 = vector.load %arg6[%c0, %c0_1] : memref<8x128xf32, #tpu.memory_space<vmem>>, vector<8x128xf32>
    %c0_2 = arith.constant 0 : index
    %c0_3 = arith.constant 0 : index
    %4 = vector.load %arg7[%c0_2, %c0_3] : memref<8x128xf32, #tpu.memory_space<vmem>>, vector<8x128xf32>
    %5 = arith.truncf %3 : vector<8x128xf32> to vector<8x128xbf16>
    %c0_4 = arith.constant 0 : index
    %c0_5 = arith.constant 0 : index
    %6 = vector.load %arg4[%c0_4, %c0_5] : memref<128x768xbf16, #tpu.memory_space<vmem>>, vector<128x768xbf16>
    %cst = arith.constant dense<0.000000e+00> : vector<8x768xf32>
    %7 = tpu.matmul %5, %6, %cst {dimension_numbers = #tpu.dot_dimension_numbers<[1], [0], [0], [1], [0, 0, 1, 1], [], []>} : vector<8x128xbf16>, vector<128x768xbf16>, vector<8x768xf32> -> vector<8x768xf32>
    %c0_6 = arith.constant 0 : index
    %c0_7 = arith.constant 0 : index
    %c0_8 = arith.constant 0 : index
    %8 = vector.load %arg2[%c0_6, %c0_7, %c0_8] : memref<1x8x512xf32, #tpu.memory_space<vmem>>, vector<1x8x512xf32>
    %9 = vector.shape_cast %8 : vector<1x8x512xf32> to vector<8x512xf32>
    %10 = vector.extract_strided_slice %7 {offsets = [0, 0], sizes = [8, 512], strides = [1, 1]} : vector<8x768xf32> to vector<8x512xf32>
    %11 = arith.addf %9, %10 : vector<8x512xf32>
    %12 = arith.negf %11 : vector<8x512xf32>
    %13 = math.exp %12 : vector<8x512xf32>
    %cst_9 = arith.constant 1.000000e+00 : f32
    %14 = vector.broadcast %cst_9 : f32 to vector<8x512xf32>
    %15 = arith.addf %14, %13 : vector<8x512xf32>
    %16 = arith.divf %14, %15 : vector<8x512xf32>
    %c0_10 = arith.constant 0 : index
    %c0_11 = arith.constant 0 : index
    %c0_12 = arith.constant 0 : index
    %17 = vector.load %arg3[%c0_10, %c0_11, %c0_12] : memref<1x8x256xf32, #tpu.memory_space<vmem>>, vector<1x8x256xf32>
    %18 = vector.shape_cast %17 : vector<1x8x256xf32> to vector<8x256xf32>
    %19 = vector.extract_strided_slice %7 {offsets = [0, 512], sizes = [8, 256], strides = [1, 1]} : vector<8x768xf32> to vector<8x256xf32>
    %20 = arith.addf %18, %19 : vector<8x256xf32>
    %21 = arith.negf %20 : vector<8x256xf32>
    %22 = math.exp %21 : vector<8x256xf32>
    %cst_13 = arith.constant 1.000000e+00 : f32
    %23 = vector.broadcast %cst_13 : f32 to vector<8x256xf32>
    %24 = arith.addf %23, %22 : vector<8x256xf32>
    %25 = arith.divf %23, %24 : vector<8x256xf32>
    %26 = vector.extract_strided_slice %16 {offsets = [0, 0], sizes = [8, 128], strides = [1, 1]} : vector<8x512xf32> to vector<8x128xf32>
    %27 = vector.extract_strided_slice %16 {offsets = [0, 128], sizes = [8, 128], strides = [1, 1]} : vector<8x512xf32> to vector<8x128xf32>
    %28 = vector.extract_strided_slice %16 {offsets = [0, 256], sizes = [8, 128], strides = [1, 1]} : vector<8x512xf32> to vector<8x128xf32>
    %29 = vector.extract_strided_slice %16 {offsets = [0, 384], sizes = [8, 128], strides = [1, 1]} : vector<8x512xf32> to vector<8x128xf32>
    %30 = vector.extract_strided_slice %25 {offsets = [0, 0], sizes = [8, 128], strides = [1, 1]} : vector<8x256xf32> to vector<8x128xf32>
    %31 = vector.extract_strided_slice %25 {offsets = [0, 128], sizes = [8, 128], strides = [1, 1]} : vector<8x256xf32> to vector<8x128xf32>
    %32 = arith.mulf %30, %26 : vector<8x128xf32>
    %33 = arith.mulf %32, %4 : vector<8x128xf32>
    %34 = arith.mulf %31, %27 : vector<8x128xf32>
    %35 = arith.mulf %34, %29 : vector<8x128xf32>
    %36 = arith.addf %33, %35 : vector<8x128xf32>
    %37 = math.tanh %36 : vector<8x128xf32>
    %38 = arith.mulf %28, %37 : vector<8x128xf32>
    %c0_14 = arith.constant 0 : index
    %c0_15 = arith.constant 0 : index
    %39 = vector.load %arg7[%c0_14, %c0_15] : memref<8x128xf32, #tpu.memory_space<vmem>>, vector<8x128xf32>
    tpu.vector_store %arg7[%c0_14, %c0_15], %36 {strides = array<i32>} : memref<8x128xf32, #tpu.memory_space<vmem>>, vector<8x128xf32>,
    %c0_16 = arith.constant 0 : index
    %c0_17 = arith.constant 0 : index
    %40 = vector.load %arg6[%c0_16, %c0_17] : memref<8x128xf32, #tpu.memory_space<vmem>>, vector<8x128xf32>
    tpu.vector_store %arg6[%c0_16, %c0_17], %38 {strides = array<i32>} : memref<8x128xf32, #tpu.memory_space<vmem>>, vector<8x128xf32>,
    %c0_18 = arith.constant 0 : index
    %c0_19 = arith.constant 0 : index
    %c0_20 = arith.constant 0 : index
    %41 = vector.load %arg5[%c0_18, %c0_19, %c0_20] : memref<1x8x128xf32, #tpu.memory_space<vmem>>, vector<1x8x128xf32>
    %42 = vector.shape_cast %41 : vector<1x8x128xf32> to vector<8x128xf32>
    %43 = vector.shape_cast %38 : vector<8x128xf32> to vector<1x8x128xf32>
    tpu.vector_store %arg5[%c0_18, %c0_19, %c0_20], %43 {strides = array<i32>} : memref<1x8x128xf32, #tpu.memory_space<vmem>>, vector<1x8x128xf32>,
    return
  }
  func.func @transform_0(%arg0: i32, %arg1: i32) -> (i32, i32, i32) {
    %c0_i32 = arith.constant 0 : i32
    %c0_i32_0 = arith.constant 0 : i32
    return %arg1, %arg0, %c0_i32 : i32, i32, i32
  }
  func.func @transform_1(%arg0: i32, %arg1: i32) -> (i32, i32, i32) {
    %c0_i32 = arith.constant 0 : i32
    %c0_i32_0 = arith.constant 0 : i32
    return %arg1, %arg0, %c0_i32 : i32, i32, i32
  }
  func.func @transform_2(%arg0: i32, %arg1: i32) -> (i32, i32) {
    %c0_i32 = arith.constant 0 : i32
    %c0_i32_0 = arith.constant 0 : i32
    %c0_i32_1 = arith.constant 0 : i32
    return %c0_i32, %c0_i32_0 : i32, i32
  }
  func.func @transform_3(%arg0: i32, %arg1: i32) -> (i32, i32, i32) {
    %c0_i32 = arith.constant 0 : i32
    %c0_i32_0 = arith.constant 0 : i32
    return %arg1, %arg0, %c0_i32 : i32, i32, i32
  }
}

module attributes {stable_mosaic.version = 11 : i64} {
  func.func @dense_kernel(%arg0: i32, %arg1: memref<64x128xf32, #tpu.memory_space<vmem>>, %arg2: memref<128x512xbf16, #tpu.memory_space<vmem>>, %arg3: memref<1x512xf32, #tpu.memory_space<vmem>>, %arg4: memref<64x512xf32, #tpu.memory_space<vmem>>) attributes {dimension_semantics = [#tpu.dimension_semantics<parallel>], iteration_bounds = array<i64: 1>, scalar_prefetch = 0 : i64, scratch_operands = 0 : i64, tpu.core_type = #tpu.core_type<tc>, window_params = [{transform_indices = @transform_0, window_bounds = array<i64: 64, 128>}, {pipeline_mode = #tpu.pipeline_mode<synchronous>, transform_indices = @transform_1, window_bounds = array<i64: 128, 512>}, {pipeline_mode = #tpu.pipeline_mode<synchronous>, transform_indices = @transform_2, window_bounds = array<i64: 1, 512>}, {transform_indices = @transform_3, window_bounds = array<i64: 64, 512>}]} {
    %c0 = arith.constant 0 : index
    %c0_0 = arith.constant 0 : index
    %0 = vector.load %arg1[%c0, %c0_0] : memref<64x128xf32, #tpu.memory_space<vmem>>, vector<64x128xf32>
    %1 = arith.truncf %0 : vector<64x128xf32> to vector<64x128xbf16>
    %c0_1 = arith.constant 0 : index
    %c0_2 = arith.constant 0 : index
    %2 = vector.load %arg2[%c0_1, %c0_2] : memref<128x512xbf16, #tpu.memory_space<vmem>>, vector<128x512xbf16>
    %cst = arith.constant dense<0.000000e+00> : vector<64x512xf32>
    %3 = tpu.matmul %1, %2, %cst {dimension_numbers = #tpu.dot_dimension_numbers<[1], [0], [0], [1], [0, 0, 1, 1], [], []>} : vector<64x128xbf16>, vector<128x512xbf16>, vector<64x512xf32> -> vector<64x512xf32>
    %c0_3 = arith.constant 0 : index
    %c0_4 = arith.constant 0 : index
    %4 = vector.load %arg3[%c0_3, %c0_4] : memref<1x512xf32, #tpu.memory_space<vmem>>, vector<1x512xf32>
    %5 = vector.broadcast %4 : vector<1x512xf32> to vector<64x512xf32>
    %6 = arith.addf %3, %5 : vector<64x512xf32>
    %c0_5 = arith.constant 0 : index
    %c0_6 = arith.constant 0 : index
    %7 = vector.load %arg4[%c0_5, %c0_6] : memref<64x512xf32, #tpu.memory_space<vmem>>, vector<64x512xf32>
    tpu.vector_store %arg4[%c0_5, %c0_6], %6 {strides = array<i32>} : memref<64x512xf32, #tpu.memory_space<vmem>>, vector<64x512xf32>,
    return
  }
  func.func @transform_0(%arg0: i32) -> (i32, i32) {
    %c0_i32 = arith.constant 0 : i32
    %c0_i32_0 = arith.constant 0 : i32
    return %arg0, %c0_i32 : i32, i32
  }
  func.func @transform_1(%arg0: i32) -> (i32, i32) {
    %c0_i32 = arith.constant 0 : i32
    %c0_i32_0 = arith.constant 0 : i32
    %c0_i32_1 = arith.constant 0 : i32
    return %c0_i32, %c0_i32_0 : i32, i32
  }
  func.func @transform_2(%arg0: i32) -> (i32, i32) {
    %c0_i32 = arith.constant 0 : i32
    %c0_i32_0 = arith.constant 0 : i32
    %c0_i32_1 = arith.constant 0 : i32
    return %c0_i32, %c0_i32_0 : i32, i32
  }
  func.func @transform_3(%arg0: i32) -> (i32, i32) {
    %c0_i32 = arith.constant 0 : i32
    %c0_i32_0 = arith.constant 0 : i32
    return %arg0, %c0_i32 : i32, i32
  }
}

module attributes {stable_mosaic.version = 11 : i64} {
  func.func @ff_kernel(%arg0: i32, %arg1: memref<64x128xf32, #tpu.memory_space<vmem>>, %arg2: memref<128x128xbf16, #tpu.memory_space<vmem>>, %arg3: memref<1x128xf32, #tpu.memory_space<vmem>>, %arg4: memref<128x128xbf16, #tpu.memory_space<vmem>>, %arg5: memref<1x128xf32, #tpu.memory_space<vmem>>, %arg6: memref<64x128xf32, #tpu.memory_space<vmem>>) attributes {dimension_semantics = [#tpu.dimension_semantics<parallel>], iteration_bounds = array<i64: 1>, scalar_prefetch = 0 : i64, scratch_operands = 0 : i64, tpu.core_type = #tpu.core_type<tc>, window_params = [{transform_indices = @transform_0, window_bounds = array<i64: 64, 128>}, {pipeline_mode = #tpu.pipeline_mode<synchronous>, transform_indices = @transform_1, window_bounds = array<i64: 128, 128>}, {pipeline_mode = #tpu.pipeline_mode<synchronous>, transform_indices = @transform_2, window_bounds = array<i64: 1, 128>}, {pipeline_mode = #tpu.pipeline_mode<synchronous>, transform_indices = @transform_3, window_bounds = array<i64: 128, 128>}, {pipeline_mode = #tpu.pipeline_mode<synchronous>, transform_indices = @transform_4, window_bounds = array<i64: 1, 128>}, {transform_indices = @transform_5, window_bounds = array<i64: 64, 128>}]} {
    %c0 = arith.constant 0 : index
    %c0_0 = arith.constant 0 : index
    %0 = vector.load %arg1[%c0, %c0_0] : memref<64x128xf32, #tpu.memory_space<vmem>>, vector<64x128xf32>
    %1 = arith.truncf %0 : vector<64x128xf32> to vector<64x128xbf16>
    %c0_1 = arith.constant 0 : index
    %c0_2 = arith.constant 0 : index
    %2 = vector.load %arg2[%c0_1, %c0_2] : memref<128x128xbf16, #tpu.memory_space<vmem>>, vector<128x128xbf16>
    %cst = arith.constant dense<0.000000e+00> : vector<64x128xf32>
    %3 = tpu.matmul %1, %2, %cst {dimension_numbers = #tpu.dot_dimension_numbers<[1], [0], [0], [1], [0, 0, 1, 1], [], []>} : vector<64x128xbf16>, vector<128x128xbf16>, vector<64x128xf32> -> vector<64x128xf32>
    %c0_3 = arith.constant 0 : index
    %c0_4 = arith.constant 0 : index
    %4 = vector.load %arg3[%c0_3, %c0_4] : memref<1x128xf32, #tpu.memory_space<vmem>>, vector<1x128xf32>
    %5 = vector.broadcast %4 : vector<1x128xf32> to vector<64x128xf32>
    %6 = arith.addf %3, %5 : vector<64x128xf32>
    %cst_5 = arith.constant 0.000000e+00 : f32
    %7 = vector.broadcast %cst_5 : f32 to vector<64x128xf32>
    %8 = arith.maximumf %6, %7 : vector<64x128xf32>
    %9 = arith.truncf %8 : vector<64x128xf32> to vector<64x128xbf16>
    %c0_6 = arith.constant 0 : index
    %c0_7 = arith.constant 0 : index
    %10 = vector.load %arg4[%c0_6, %c0_7] : memref<128x128xbf16, #tpu.memory_space<vmem>>, vector<128x128xbf16>
    %cst_8 = arith.constant dense<0.000000e+00> : vector<64x128xf32>
    %11 = tpu.matmul %9, %10, %cst_8 {dimension_numbers = #tpu.dot_dimension_numbers<[1], [0], [0], [1], [0, 0, 1, 1], [], []>} : vector<64x128xbf16>, vector<128x128xbf16>, vector<64x128xf32> -> vector<64x128xf32>
    %c0_9 = arith.constant 0 : index
    %c0_10 = arith.constant 0 : index
    %12 = vector.load %arg5[%c0_9, %c0_10] : memref<1x128xf32, #tpu.memory_space<vmem>>, vector<1x128xf32>
    %13 = vector.broadcast %12 : vector<1x128xf32> to vector<64x128xf32>
    %14 = arith.addf %11, %13 : vector<64x128xf32>
    %c0_11 = arith.constant 0 : index
    %c0_12 = arith.constant 0 : index
    %15 = vector.load %arg6[%c0_11, %c0_12] : memref<64x128xf32, #tpu.memory_space<vmem>>, vector<64x128xf32>
    tpu.vector_store %arg6[%c0_11, %c0_12], %14 {strides = array<i32>} : memref<64x128xf32, #tpu.memory_space<vmem>>, vector<64x128xf32>,
    return
  }
  func.func @transform_0(%arg0: i32) -> (i32, i32) {
    %c0_i32 = arith.constant 0 : i32
    %c0_i32_0 = arith.constant 0 : i32
    return %arg0, %c0_i32 : i32, i32
  }
  func.func @transform_1(%arg0: i32) -> (i32, i32) {
    %c0_i32 = arith.constant 0 : i32
    %c0_i32_0 = arith.constant 0 : i32
    %c0_i32_1 = arith.constant 0 : i32
    return %c0_i32, %c0_i32_0 : i32, i32
  }
  func.func @transform_2(%arg0: i32) -> (i32, i32) {
    %c0_i32 = arith.constant 0 : i32
    %c0_i32_0 = arith.constant 0 : i32
    %c0_i32_1 = arith.constant 0 : i32
    return %c0_i32, %c0_i32_0 : i32, i32
  }
  func.func @transform_3(%arg0: i32) -> (i32, i32) {
    %c0_i32 = arith.constant 0 : i32
    %c0_i32_0 = arith.constant 0 : i32
    %c0_i32_1 = arith.constant 0 : i32
    return %c0_i32, %c0_i32_0 : i32, i32
  }
  func.func @transform_4(%arg0: i32) -> (i32, i32) {
    %c0_i32 = arith.constant 0 : i32
    %c0_i32_0 = arith.constant 0 : i32
    %c0_i32_1 = arith.constant 0 : i32
    return %c0_i32, %c0_i32_0 : i32, i32
  }
  func.func @transform_5(%arg0: i32) -> (i32, i32) {
    %c0_i32 = arith.constant 0 : i32
    %c0_i32_0 = arith.constant 0 : i32
    return %arg0, %c0_i32 : i32, i32
  }
}

</mosaic_0001>

<bundles_post_ra>
// kernel: run.8
= control target key start
LH: loop header
LB: loop body
LE: loop exit
PB: predicated region body
PF: predicated region fallthrough
CT: control target
= control target key end

     0   :  { %vm51_vm0 = vcmask 1041408   ;;  %vm38_vm1 = vcmask 31744   ;;  %s250_s1 = inlined_call_operand.vmem [shape: bf16[4,256], index: 1, kind: input, shape index: {}]   ;;  %s251_s0 = inlined_call_operand.vmem [shape: f32[64,4], index: 0, kind: input, shape index: {}]   ;;  %s252_s2 = inlined_call_operand.vmem [shape: f32[1,256], index: 2, kind: input, shape index: {}]   ;;  %s253_s3 = inlined_call_operand.vmem [shape: f32[64,256], index: 3, kind: output, shape index: {}]  }
   0x1   :  { %v27_v0 = vld [vmem:[%s250_s1] sm:$0xf]  ;;  %v16_v2 = vld [vmem:[%s251_s0 + $0x8] sm:$0xff]  ;;  %v17_v11 = vld [vmem:[%s251_s0 + $0x10] sm:$0xff] }
   0x2   :  { %35 = vst [vmem:[#allocation1] ss:$4 sm:$0xff] %v27_v0  ;;  %v15_v1 = vld [vmem:[%s251_s0] sm:$0xff]  ;;  %v20_v4 = vld [vmem:[%s251_s0 + $0x28] sm:$0xff]  ;;  %v18_v12 = vld [vmem:[%s251_s0 + $0x18] sm:$0xff] }
   0x3   :  { %v19_v3 = vld [vmem:[%s251_s0 + $0x20] sm:$0xff]  ;;  %v23_v9 = vpack.c.bf16 %v16_v2, %v15_v1  ;;  %v21_v13 = vld [vmem:[%s251_s0 + $0x30] sm:$0xff]  ;;  %v22_v14 = vld [vmem:[%s251_s0 + $0x38] sm:$0xff]  ;;  %v24_v15 = vpack.c.bf16 %v18_v12, %v17_v11 }
   0x4   :  { %v25_v10 = vpack.c.bf16 %v20_v4, %v19_v3  ;;  %v26_v16 = vpack.c.bf16 %v22_v14, %v21_v13  ;;  %v28_v17 = vld [vmem:[%s252_s2] sm:$0x3] }
   0x5   :  { %v30_v18 = vperm.slane %v28_v17, 0  ;;  %v31_v19 = vperm.slane %v28_v17, 1 }
   0x9   :  { %v36_v5 = vld.sshfl [vmem:[#allocation1] sm:$0xff pattern:$0x73625140]  ;;  %v37_v6 = vld.sshfl [vmem:[#allocation1 + $0x8] sm:$0xff pattern:$0x73625140] }
   0xa   :  { %v52_v7 = vsel %vm51_vm0, %v36_v5, 0  ;;  %v54_v8 = vsel %vm51_vm0, %v37_v6, 0 }
   0xb   :  { %63 = vmatpush.bf16.msra.mxu0 %v52_v7  ;;  %142 = vmatpush.bf16.msra.mxu2 %v52_v7 }
   0xc   :  { %92 = vmatpush.bf16.msra.mxu1 %v54_v8  ;;  %143 = vmatpush.bf16.msra.mxu3 %v54_v8 }
   0xe   :  { %134 = vmatmul.msk.bf16.vlgmr.msra.gmra.mxu0 %vm38_vm1, %v23_v9  ;;  %136 = vmatmul.msk.bf16.vlgmr.msra.gmra.mxu2 %vm38_vm1, %v25_v10 }
   0xf   :  { %138 = vmatmul.msk.bf16.vlgmr.msra.gmra.mxu1 %vm38_vm1, %v23_v9  ;;  %140 = vmatmul.msk.bf16.vlgmr.msra.gmra.mxu3 %vm38_vm1, %v25_v10 }
  0x1e   :  { %135 = vmatmul.msk.bf16.gmra.mxu0 %vm38_vm1, %v24_v15  ;;  %137 = vmatmul.msk.bf16.gmra.mxu2 %vm38_vm1, %v26_v16 }
  0x1f   :  { %139 = vmatmul.msk.bf16.gmra.mxu1 %vm38_vm1, %v24_v15  ;;  %141 = vmatmul.msk.bf16.gmra.mxu3 %vm38_vm1, %v26_v16 }
  0x8b   :  { %v65_v20 = vpop.f32.mrf.mxu0 }
  0x8c   :  { %v66_v21 = vadd.f32 %v65_v20, %v30_v18  ;;  %v94_v22 = vpop.f32.mrf.mxu1 }
  0x8d   :  { %v95_v23 = vadd.f32 %v94_v22, %v31_v19 }
  0x8e   :  { %114 = vst [vmem:[%s253_s3] sm:$0xff] %v66_v21 }
  0x8f   :  { %115 = vst [vmem:[%s253_s3 + $0x8] sm:$0xff] %v95_v23 }
  0x91   :  { %v75_v24 = vpop.f32.mrf.mxu2 }
  0x92   :  { %v76_v25 = vadd.f32 %v75_v24, %v30_v18  ;;  %v104_v26 = vpop.f32.mrf.mxu3 }
  0x93   :  { %v105_v27 = vadd.f32 %v104_v26, %v31_v19  ;;  %v67_v28 = vpop.f32.mrf.mxu0 }
  0x94   :  { %122 = vst [vmem:[%s253_s3 + $0x40] sm:$0xff] %v76_v25  ;;  %v68_v29 = vadd.f32 %v67_v28, %v30_v18  ;;  %v96_v30 = vpop.f32.mrf.mxu1 }
  0x95   :  { %123 = vst [vmem:[%s253_s3 + $0x48] sm:$0xff] %v105_v27  ;;  %v97_v31 = vadd.f32 %v96_v30, %v31_v19 }
  0x96   :  { %116 = vst [vmem:[%s253_s3 + $0x10] sm:$0xff] %v68_v29 }
  0x97   :  { %117 = vst [vmem:[%s253_s3 + $0x18] sm:$0xff] %v97_v31 }
  0x99   :  { %v77_v32 = vpop.f32.mrf.mxu2 }
  0x9a   :  { %v78_v33 = vadd.f32 %v77_v32, %v30_v18  ;;  %v106_v34 = vpop.f32.mrf.mxu3 }
  0x9b   :  { %v107_v35 = vadd.f32 %v106_v34, %v31_v19  ;;  %v70_v36 = vpop.f32.mrf.mxu0 }
  0x9c   :  { %124 = vst [vmem:[%s253_s3 + $0x50] sm:$0xff] %v78_v33  ;;  %v71_v37 = vadd.f32 %v70_v36, %v30_v18  ;;  %v99_v38 = vpop.f32.mrf.mxu1 }
  0x9d   :  { %125 = vst [vmem:[%s253_s3 + $0x58] sm:$0xff] %v107_v35  ;;  %v100_v39 = vadd.f32 %v99_v38, %v31_v19 }
  0x9e   :  { %118 = vst [vmem:[%s253_s3 + $0x20] sm:$0xff] %v71_v37 }
  0x9f   :  { %119 = vst [vmem:[%s253_s3 + $0x28] sm:$0xff] %v100_v39 }
  0xa1   :  { %v80_v40 = vpop.f32.mrf.mxu2 }
  0xa2   :  { %v81_v41 = vadd.f32 %v80_v40, %v30_v18  ;;  %v109_v42 = vpop.f32.mrf.mxu3 }
  0xa3   :  { %v110_v43 = vadd.f32 %v109_v42, %v31_v19  ;;  %v72_v44 = vpop.f32.mrf.mxu0 }
  0xa4   :  { %126 = vst [vmem:[%s253_s3 + $0x60] sm:$0xff] %v81_v41  ;;  %v73_v45 = vadd.f32 %v72_v44, %v30_v18  ;;  %v101_v46 = vpop.f32.mrf.mxu1 }
  0xa5   :  { %127 = vst [vmem:[%s253_s3 + $0x68] sm:$0xff] %v110_v43  ;;  %v102_v47 = vadd.f32 %v101_v46, %v31_v19 }
  0xa6   :  { %120 = vst [vmem:[%s253_s3 + $0x30] sm:$0xff] %v73_v45 }
  0xa7   :  { %121 = vst [vmem:[%s253_s3 + $0x38] sm:$0xff] %v102_v47 }
  0xa9   :  { %v82_v48 = vpop.f32.mrf.mxu2 }
  0xaa   :  { %v83_v49 = vadd.f32 %v82_v48, %v30_v18  ;;  %v111_v50 = vpop.f32.mrf.mxu3 }
  0xab   :  { %v112_v51 = vadd.f32 %v111_v50, %v31_v19 }
  0xac   :  { %128 = vst [vmem:[%s253_s3 + $0x70] sm:$0xff] %v83_v49 }
  0xad   :  { %129 = vst [vmem:[%s253_s3 + $0x78] sm:$0xff] %v112_v51 }

// kernel: run.7
= control target key start
LH: loop header
LB: loop body
LE: loop exit
PB: predicated region body
PF: predicated region fallthrough
CT: control target
= control target key end

     0   :  { %vm57_vm0 = vcmask 1041408   ;;  %vm44_vm1 = vcmask 31744   ;;  %s436_s1 = inlined_call_operand.vmem [shape: bf16[4,512], index: 1, kind: input, shape index: {}]   ;;  %s437_s0 = inlined_call_operand.vmem [shape: f32[64,4], index: 0, kind: input, shape index: {}]   ;;  %s438_s2 = inlined_call_operand.vmem [shape: f32[1,512], index: 2, kind: input, shape index: {}]   ;;  %s439_s3 = inlined_call_operand.vmem [shape: f32[64,512], index: 3, kind: output, shape index: {}]  }
   0x1   :  { %v27_v0 = vld [vmem:[%s436_s1] sm:$0xff]  ;;  %v16_v2 = vld [vmem:[%s437_s0 + $0x8] sm:$0xff]  ;;  %v17_v12 = vld [vmem:[%s437_s0 + $0x10] sm:$0xff] }
   0x2   :  { %39 = vst [vmem:[#allocation1] ss:$4 sm:$0xff] %v27_v0  ;;  %v15_v1 = vld [vmem:[%s437_s0] sm:$0xff]  ;;  %v18_v13 = vld [vmem:[%s437_s0 + $0x18] sm:$0xff]  ;;  %v20_v16 = vld [vmem:[%s437_s0 + $0x28] sm:$0xff] }
   0x3   :  { %v23_v8 = vpack.c.bf16 %v16_v2, %v15_v1  ;;  %v24_v14 = vpack.c.bf16 %v18_v13, %v17_v12  ;;  %v19_v15 = vld [vmem:[%s437_s0 + $0x20] sm:$0xff]  ;;  %v21_v18 = vld [vmem:[%s437_s0 + $0x30] sm:$0xff]  ;;  %v22_v19 = vld [vmem:[%s437_s0 + $0x38] sm:$0xff] }
   0x4   :  { %v25_v17 = vpack.c.bf16 %v20_v16, %v19_v15  ;;  %v26_v20 = vpack.c.bf16 %v22_v19, %v21_v18  ;;  %v28_v21 = vld [vmem:[%s438_s2] sm:$0xf] }
   0x5   :  { %v300_v22 = vperm.slane %v28_v21, 0  ;;  %v302_v23 = vperm.slane %v28_v21, 1  ;;  %v312_v28 = vperm.slane %v28_v21, 2  ;;  %v314_v29 = vperm.slane %v28_v21, 3 }
   0x9   :  { %v40_v3 = vld.sshfl [vmem:[#allocation1] sm:$0xff pattern:$0x73625140]  ;;  %v41_v4 = vld.sshfl [vmem:[#allocation1 + $0x8] sm:$0xff pattern:$0x73625140] }
   0xa   :  { %v58_v5 = vsel %vm57_vm0, %v40_v3, 0  ;;  %v60_v6 = vsel %vm57_vm0, %v41_v4, 0  ;;  %v42_v7 = vld.sshfl [vmem:[#allocation1 + $0x10] sm:$0xff pattern:$0x73625140] }
   0xb   :  { %73 = vmatpush.bf16.msra.mxu0 %v58_v5  ;;  %102 = vmatpush.bf16.msra.mxu1 %v60_v6  ;;  %v62_v9 = vsel %vm57_vm0, %v42_v7, 0  ;;  %v43_v10 = vld.sshfl [vmem:[#allocation1 + $0x18] sm:$0xff pattern:$0x73625140] }
   0xc   :  { %131 = vmatpush.bf16.msra.mxu2 %v62_v9  ;;  %v64_v11 = vsel %vm57_vm0, %v43_v10, 0 }
   0xd   :  { %160 = vmatpush.bf16.msra.mxu3 %v64_v11 }
   0xe   :  { %218 = vmatmul.msk.bf16.vlgmr.msra.gmra.mxu0 %vm44_vm1, %v23_v8  ;;  %222 = vmatmul.msk.bf16.vlgmr.msra.gmra.mxu1 %vm44_vm1, %v23_v8 }
   0xf   :  { %226 = vmatmul.msk.bf16.vlgmr.msra.gmra.mxu2 %vm44_vm1, %v23_v8 }
  0x10   :  { %230 = vmatmul.msk.bf16.vlgmr.msra.gmra.mxu3 %vm44_vm1, %v23_v8 }
  0x1e   :  { %219 = vmatmul.msk.bf16.gmra.mxu0 %vm44_vm1, %v24_v14  ;;  %223 = vmatmul.msk.bf16.gmra.mxu1 %vm44_vm1, %v24_v14 }
  0x1f   :  { %227 = vmatmul.msk.bf16.gmra.mxu2 %vm44_vm1, %v24_v14 }
  0x20   :  { %231 = vmatmul.msk.bf16.gmra.mxu3 %vm44_vm1, %v24_v14 }
  0x2e   :  { %220 = vmatmul.msk.bf16.gmra.mxu0 %vm44_vm1, %v25_v17  ;;  %224 = vmatmul.msk.bf16.gmra.mxu1 %vm44_vm1, %v25_v17 }
  0x2f   :  { %228 = vmatmul.msk.bf16.gmra.mxu2 %vm44_vm1, %v25_v17 }
  0x30   :  { %232 = vmatmul.msk.bf16.gmra.mxu3 %vm44_vm1, %v25_v17 }
  0x3e   :  { %221 = vmatmul.msk.bf16.gmra.mxu0 %vm44_vm1, %v26_v20  ;;  %225 = vmatmul.msk.bf16.gmra.mxu1 %vm44_vm1, %v26_v20 }
  0x3f   :  { %229 = vmatmul.msk.bf16.gmra.mxu2 %vm44_vm1, %v26_v20 }
  0x40   :  { %233 = vmatmul.msk.bf16.gmra.mxu3 %vm44_vm1, %v26_v20 }
  0x8b   :  { %v75_v24 = vpop.f32.mrf.mxu0  ;;  %v104_v25 = vpop.f32.mrf.mxu1 }
  0x8c   :  { %v76_v26 = vadd.f32 %v75_v24, %v300_v22  ;;  %v105_v27 = vadd.f32 %v104_v25, %v302_v23 }
  0x8e   :  { %182 = vst [vmem:[%s439_s3] sm:$0xff] %v76_v26 }
  0x8f   :  { %183 = vst [vmem:[%s439_s3 + $0x8] sm:$0xff] %v105_v27 }
  0x92   :  { %v133_v30 = vpop.f32.mrf.mxu2 }
  0x93   :  { %v134_v31 = vadd.f32 %v133_v30, %v312_v28  ;;  %v162_v32 = vpop.f32.mrf.mxu3  ;;  %v77_v33 = vpop.f32.mrf.mxu0 }
  0x94   :  { %v163_v34 = vadd.f32 %v162_v32, %v314_v29  ;;  %v78_v35 = vadd.f32 %v77_v33, %v300_v22  ;;  %v106_v36 = vpop.f32.mrf.mxu1 }
  0x95   :  { %184 = vst [vmem:[%s439_s3 + $0x10] sm:$0xff] %v134_v31  ;;  %v107_v37 = vadd.f32 %v106_v36, %v302_v23 }
  0x96   :  { %185 = vst [vmem:[%s439_s3 + $0x18] sm:$0xff] %v163_v34 }
  0x97   :  { %186 = vst [vmem:[%s439_s3 + $0x20] sm:$0xff] %v78_v35 }
  0x98   :  { %187 = vst [vmem:[%s439_s3 + $0x28] sm:$0xff] %v107_v37 }
  0x9a   :  { %v135_v38 = vpop.f32.mrf.mxu2 }
  0x9b   :  { %v136_v39 = vadd.f32 %v135_v38, %v312_v28  ;;  %v164_v40 = vpop.f32.mrf.mxu3  ;;  %v80_v41 = vpop.f32.mrf.mxu0 }
  0x9c   :  { %v165_v42 = vadd.f32 %v164_v40, %v314_v29  ;;  %v81_v43 = vadd.f32 %v80_v41, %v300_v22  ;;  %v109_v44 = vpop.f32.mrf.mxu1 }
  0x9d   :  { %188 = vst [vmem:[%s439_s3 + $0x30] sm:$0xff] %v136_v39  ;;  %v110_v45 = vadd.f32 %v109_v44, %v302_v23 }
  0x9e   :  { %189 = vst [vmem:[%s439_s3 + $0x38] sm:$0xff] %v165_v42 }
  0x9f   :  { %190 = vst [vmem:[%s439_s3 + $0x40] sm:$0xff] %v81_v43 }
  0xa0   :  { %191 = vst [vmem:[%s439_s3 + $0x48] sm:$0xff] %v110_v45 }
  0xa2   :  { %v138_v46 = vpop.f32.mrf.mxu2 }
  0xa3   :  { %v139_v47 = vadd.f32 %v138_v46, %v312_v28  ;;  %v167_v48 = vpop.f32.mrf.mxu3  ;;  %v82_v49 = vpop.f32.mrf.mxu0 }
  0xa4   :  { %v168_v50 = vadd.f32 %v167_v48, %v314_v29  ;;  %v83_v51 = vadd.f32 %v82_v49, %v300_v22  ;;  %v111_v52 = vpop.f32.mrf.mxu1 }
  0xa5   :  { %192 = vst [vmem:[%s439_s3 + $0x50] sm:$0xff] %v139_v47  ;;  %v112_v53 = vadd.f32 %v111_v52, %v302_v23 }
  0xa6   :  { %193 = vst [vmem:[%s439_s3 + $0x58] sm:$0xff] %v168_v50 }
  0xa7   :  { %194 = vst [vmem:[%s439_s3 + $0x60] sm:$0xff] %v83_v51 }
  0xa8   :  { %195 = vst [vmem:[%s439_s3 + $0x68] sm:$0xff] %v112_v53 }
  0xaa   :  { %v140_v54 = vpop.f32.mrf.mxu2 }
  0xab   :  { %v141_v55 = vadd.f32 %v140_v54, %v312_v28  ;;  %v169_v56 = vpop.f32.mrf.mxu3  ;;  %v85_v57 = vpop.f32.mrf.mxu0 }
  0xac   :  { %v170_v58 = vadd.f32 %v169_v56, %v314_v29  ;;  %v86_v59 = vadd.f32 %v85_v57, %v300_v22  ;;  %v114_v60 = vpop.f32.mrf.mxu1 }
  0xad   :  { %196 = vst [vmem:[%s439_s3 + $0x70] sm:$0xff] %v141_v55  ;;  %v115_v61 = vadd.f32 %v114_v60, %v302_v23 }
  0xae   :  { %197 = vst [vmem:[%s439_s3 + $0x78] sm:$0xff] %v170_v58 }
  0xaf   :  { %198 = vst [vmem:[%s439_s3 + $0x80] sm:$0xff] %v86_v59 }
  0xb0   :  { %199 = vst [vmem:[%s439_s3 + $0x88] sm:$0xff] %v115_v61 }
  0xb2   :  { %v143_v62 = vpop.f32.mrf.mxu2 }
  0xb3   :  { %v144_v63 = vadd.f32 %v143_v62, %v312_v28  ;;  %v172_v0 = vpop.f32.mrf.mxu3  ;;  %v87_v1 = vpop.f32.mrf.mxu0 }
  0xb4   :  { %v173_v2 = vadd.f32 %v172_v0, %v314_v29  ;;  %v88_v3 = vadd.f32 %v87_v1, %v300_v22  ;;  %v116_v4 = vpop.f32.mrf.mxu1 }
  0xb5   :  { %200 = vst [vmem:[%s439_s3 + $0x90] sm:$0xff] %v144_v63  ;;  %v117_v5 = vadd.f32 %v116_v4, %v302_v23 }
  0xb6   :  { %201 = vst [vmem:[%s439_s3 + $0x98] sm:$0xff] %v173_v2 }
  0xb7   :  { %202 = vst [vmem:[%s439_s3 + $0xa0] sm:$0xff] %v88_v3 }
  0xb8   :  { %203 = vst [vmem:[%s439_s3 + $0xa8] sm:$0xff] %v117_v5 }
  0xba   :  { %v145_v6 = vpop.f32.mrf.mxu2 }
  0xbb   :  { %v146_v7 = vadd.f32 %v145_v6, %v312_v28  ;;  %v174_v8 = vpop.f32.mrf.mxu3  ;;  %v90_v9 = vpop.f32.mrf.mxu0 }
  0xbc   :  { %v175_v10 = vadd.f32 %v174_v8, %v314_v29  ;;  %v91_v11 = vadd.f32 %v90_v9, %v300_v22  ;;  %v119_v12 = vpop.f32.mrf.mxu1 }
  0xbd   :  { %204 = vst [vmem:[%s439_s3 + $0xb0] sm:$0xff] %v146_v7  ;;  %v120_v13 = vadd.f32 %v119_v12, %v302_v23 }
  0xbe   :  { %205 = vst [vmem:[%s439_s3 + $0xb8] sm:$0xff] %v175_v10 }
  0xbf   :  { %206 = vst [vmem:[%s439_s3 + $0xc0] sm:$0xff] %v91_v11 }
  0xc0   :  { %207 = vst [vmem:[%s439_s3 + $0xc8] sm:$0xff] %v120_v13 }
  0xc2   :  { %v148_v14 = vpop.f32.mrf.mxu2 }
  0xc3   :  { %v149_v15 = vadd.f32 %v148_v14, %v312_v28  ;;  %v177_v16 = vpop.f32.mrf.mxu3  ;;  %v92_v17 = vpop.f32.mrf.mxu0 }
  0xc4   :  { %v178_v18 = vadd.f32 %v177_v16, %v314_v29  ;;  %v93_v19 = vadd.f32 %v92_v17, %v300_v22  ;;  %v121_v20 = vpop.f32.mrf.mxu1 }
  0xc5   :  { %208 = vst [vmem:[%s439_s3 + $0xd0] sm:$0xff] %v149_v15  ;;  %v122_v21 = vadd.f32 %v121_v20, %v302_v23 }
  0xc6   :  { %209 = vst [vmem:[%s439_s3 + $0xd8] sm:$0xff] %v178_v18 }
  0xc7   :  { %210 = vst [vmem:[%s439_s3 + $0xe0] sm:$0xff] %v93_v19 }
  0xc8   :  { %211 = vst [vmem:[%s439_s3 + $0xe8] sm:$0xff] %v122_v21 }
  0xca   :  { %v150_v22 = vpop.f32.mrf.mxu2 }
  0xcb   :  { %v151_v24 = vadd.f32 %v150_v22, %v312_v28  ;;  %v179_v25 = vpop.f32.mrf.mxu3 }
  0xcc   :  { %v180_v26 = vadd.f32 %v179_v25, %v314_v29 }
  0xcd   :  { %212 = vst [vmem:[%s439_s3 + $0xf0] sm:$0xff] %v151_v24 }
  0xce   :  { %213 = vst [vmem:[%s439_s3 + $0xf8] sm:$0xff] %v180_v26 }

// kernel: run.10
= control target key start
LH: loop header
LB: loop body
LE: loop exit
PB: predicated region body
PF: predicated region fallthrough
CT: control target
= control target key end

     0   :  { %s915_s1 = inlined_call_operand.vmem [shape: bf16[128,512], index: 1, kind: input, shape index: {}]   ;;  %s916_s0 = inlined_call_operand.vmem [shape: f32[64,128], index: 0, kind: input, shape index: {}]   ;;  %s917_s2 = inlined_call_operand.vmem [shape: f32[1,512], index: 2, kind: input, shape index: {}]   ;;  %s918_s3 = inlined_call_operand.vmem [shape: f32[64,512], index: 3, kind: output, shape index: {}]  }
   0x1   :  { %v494_v0 = vld [vmem:[%s915_s1 + $0xe0] sm:$0xf]  ;;  %v538_v1 = vld [vmem:[%s915_s1 + $0xec] sm:$0xf0]  ;;  %v536_v2 = vld [vmem:[%s915_s1 + $0xe4] sm:$0xf] }
   0x2   :  { %v495_v3 = vor.u32 %v538_v1, %v494_v0  ;;  %v496_v4 = vld [vmem:[%s915_s1 + $0xf0] sm:$0xf0]  ;;  %v502_v5 = vld [vmem:[%s915_s1 + $0xe8] sm:$0xf]  ;;  %v539_v6 = vld [vmem:[%s915_s1 + $0xf4] sm:$0xf0] }
   0x3   :  { %v499_v7 = vor.u32 %v536_v2, %v496_v4  ;;  %v503_v8 = vor.u32 %v539_v6, %v502_v5  ;;  %v537_v9 = vld [vmem:[%s915_s1 + $0xec] sm:$0xf]  ;;  %v504_v10 = vld [vmem:[%s915_s1 + $0xf8] sm:$0xf0]  ;;  %v478_v11 = vld [vmem:[%s915_s1 + $0xc0] sm:$0xf] }
   0x4   :  { %228 = vmatpush.bf16.msra.mxu0 %v495_v3  ;;  %v507_v12 = vor.u32 %v537_v9, %v504_v10  ;;  %v534_v13 = vld [vmem:[%s915_s1 + $0xcc] sm:$0xf0]  ;;  %v532_v14 = vld [vmem:[%s915_s1 + $0xc4] sm:$0xf]  ;;  %v480_v15 = vld [vmem:[%s915_s1 + $0xd0] sm:$0xf0] }
   0x5   :  { %257 = vmatpush.bf16.msra.mxu1 %v499_v7  ;;  %286 = vmatpush.bf16.msra.mxu2 %v503_v8  ;;  %v479_v16 = vor.u32 %v534_v13, %v478_v11  ;;  %v483_v17 = vor.u32 %v532_v14, %v480_v15  ;;  %v486_v18 = vld [vmem:[%s915_s1 + $0xc8] sm:$0xf]  ;;  %v535_v19 = vld [vmem:[%s915_s1 + $0xd4] sm:$0xf0]  ;;  %v533_v20 = vld [vmem:[%s915_s1 + $0xcc] sm:$0xf] }
   0x6   :  { %315 = vmatpush.bf16.msra.mxu3 %v507_v12  ;;  %v487_v21 = vor.u32 %v535_v19, %v486_v18  ;;  %v488_v22 = vld [vmem:[%s915_s1 + $0xd8] sm:$0xf0]  ;;  %v462_v23 = vld [vmem:[%s915_s1 + $0xa0] sm:$0xf]  ;;  %v530_v24 = vld [vmem:[%s915_s1 + $0xac] sm:$0xf0] }
   0x7   :  { %v491_v25 = vor.u32 %v533_v20, %v488_v22  ;;  %v528_v26 = vld [vmem:[%s915_s1 + $0xa4] sm:$0xf]  ;;  %v464_v27 = vld [vmem:[%s915_s1 + $0xb0] sm:$0xf0]  ;;  %v470_v28 = vld [vmem:[%s915_s1 + $0xa8] sm:$0xf]  ;;  %v463_v29 = vor.u32 %v530_v24, %v462_v23 }
   0x8   :  { %229 = vmatpush.bf16.msra.mxu0 %v479_v16  ;;  %v531_v30 = vld [vmem:[%s915_s1 + $0xb4] sm:$0xf0]  ;;  %v529_v31 = vld [vmem:[%s915_s1 + $0xac] sm:$0xf]  ;;  %v472_v32 = vld [vmem:[%s915_s1 + $0xb8] sm:$0xf0]  ;;  %v467_v33 = vor.u32 %v528_v26, %v464_v27 }
   0x9   :  { %258 = vmatpush.bf16.msra.mxu1 %v483_v17  ;;  %287 = vmatpush.bf16.msra.mxu2 %v487_v21  ;;  %v471_v34 = vor.u32 %v531_v30, %v470_v28  ;;  %v446_v35 = vld [vmem:[%s915_s1 + $0x80] sm:$0xf]  ;;  %v526_v36 = vld [vmem:[%s915_s1 + $0x8c] sm:$0xf0]  ;;  %v524_v37 = vld [vmem:[%s915_s1 + $0x84] sm:$0xf]  ;;  %v475_v38 = vor.u32 %v529_v31, %v472_v32 }
   0xa   :  { %316 = vmatpush.bf16.msra.mxu3 %v491_v25  ;;  %v448_v39 = vld [vmem:[%s915_s1 + $0x90] sm:$0xf0]  ;;  %v454_v40 = vld [vmem:[%s915_s1 + $0x88] sm:$0xf]  ;;  %v527_v41 = vld [vmem:[%s915_s1 + $0x94] sm:$0xf0]  ;;  %v447_v44 = vor.u32 %v526_v36, %v446_v35 }
   0xb   :  { %v525_v42 = vld [vmem:[%s915_s1 + $0x8c] sm:$0xf]  ;;  %v456_v43 = vld [vmem:[%s915_s1 + $0x98] sm:$0xf0]  ;;  %v451_v45 = vor.u32 %v524_v37, %v448_v39  ;;  %v455_v46 = vor.u32 %v527_v41, %v454_v40  ;;  %v430_v47 = vld [vmem:[%s915_s1 + $0x60] sm:$0xf] }
   0xc   :  { %230 = vmatpush.bf16.msra.mxu0 %v463_v29  ;;  %v522_v48 = vld [vmem:[%s915_s1 + $0x6c] sm:$0xf0]  ;;  %v520_v49 = vld [vmem:[%s915_s1 + $0x64] sm:$0xf]  ;;  %v459_v50 = vor.u32 %v525_v42, %v456_v43  ;;  %v432_v51 = vld [vmem:[%s915_s1 + $0x70] sm:$0xf0] }
   0xd   :  { %259 = vmatpush.bf16.msra.mxu1 %v467_v33  ;;  %288 = vmatpush.bf16.msra.mxu2 %v471_v34  ;;  %v438_v52 = vld [vmem:[%s915_s1 + $0x68] sm:$0xf]  ;;  %v523_v53 = vld [vmem:[%s915_s1 + $0x74] sm:$0xf0]  ;;  %v521_v54 = vld [vmem:[%s915_s1 + $0x6c] sm:$0xf]  ;;  %v431_v56 = vor.u32 %v522_v48, %v430_v47  ;;  %v435_v57 = vor.u32 %v520_v49, %v432_v51 }
   0xe   :  { %317 = vmatpush.bf16.msra.mxu3 %v475_v38  ;;  %v440_v55 = vld [vmem:[%s915_s1 + $0x78] sm:$0xf0]  ;;  %v439_v58 = vor.u32 %v523_v53, %v438_v52  ;;  %v414_v59 = vld [vmem:[%s915_s1 + $0x40] sm:$0xf]  ;;  %v518_v60 = vld [vmem:[%s915_s1 + $0x4c] sm:$0xf0] }
   0xf   :  { %v516_v61 = vld [vmem:[%s915_s1 + $0x44] sm:$0xf]  ;;  %v443_v62 = vor.u32 %v521_v54, %v440_v55  ;;  %v416_v63 = vld [vmem:[%s915_s1 + $0x50] sm:$0xf0]  ;;  %v422_v0 = vld [vmem:[%s915_s1 + $0x48] sm:$0xf]  ;;  %v415_v4 = vor.u32 %v518_v60, %v414_v59 }
  0x10   :  { %231 = vmatpush.bf16.msra.mxu0 %v447_v44  ;;  %v519_v1 = vld [vmem:[%s915_s1 + $0x54] sm:$0xf0]  ;;  %v517_v2 = vld [vmem:[%s915_s1 + $0x4c] sm:$0xf]  ;;  %v424_v3 = vld [vmem:[%s915_s1 + $0x58] sm:$0xf0]  ;;  %v419_v5 = vor.u32 %v516_v61, %v416_v63 }
  0x11   :  { %260 = vmatpush.bf16.msra.mxu1 %v451_v45  ;;  %289 = vmatpush.bf16.msra.mxu2 %v455_v46  ;;  %v423_v6 = vor.u32 %v519_v1, %v422_v0  ;;  %v398_v7 = vld [vmem:[%s915_s1 + $0x20] sm:$0xf]  ;;  %v514_v8 = vld [vmem:[%s915_s1 + $0x2c] sm:$0xf0]  ;;  %v512_v9 = vld [vmem:[%s915_s1 + $0x24] sm:$0xf]  ;;  %v427_v10 = vor.u32 %v517_v2, %v424_v3 }
  0x12   :  { %318 = vmatpush.bf16.msra.mxu3 %v459_v50  ;;  %v400_v11 = vld [vmem:[%s915_s1 + $0x30] sm:$0xf0]  ;;  %v406_v12 = vld [vmem:[%s915_s1 + $0x28] sm:$0xf]  ;;  %v515_v13 = vld [vmem:[%s915_s1 + $0x34] sm:$0xf0]  ;;  %v399_v16 = vor.u32 %v514_v8, %v398_v7 }
  0x13   :  { %v513_v14 = vld [vmem:[%s915_s1 + $0x2c] sm:$0xf]  ;;  %v408_v15 = vld [vmem:[%s915_s1 + $0x38] sm:$0xf0]  ;;  %v403_v17 = vor.u32 %v512_v9, %v400_v11  ;;  %v407_v18 = vor.u32 %v515_v13, %v406_v12  ;;  %v382_v19 = vld [vmem:[%s915_s1] sm:$0xf] }
  0x14   :  { %232 = vmatpush.bf16.msra.mxu0 %v431_v56  ;;  %v510_v20 = vld [vmem:[%s915_s1 + $0xc] sm:$0xf0]  ;;  %v508_v21 = vld [vmem:[%s915_s1 + $0x4] sm:$0xf]  ;;  %v411_v22 = vor.u32 %v513_v14, %v408_v15  ;;  %v384_v23 = vld [vmem:[%s915_s1 + $0x10] sm:$0xf0] }
  0x15   :  { %261 = vmatpush.bf16.msra.mxu1 %v435_v57  ;;  %290 = vmatpush.bf16.msra.mxu2 %v439_v58  ;;  %v390_v24 = vld [vmem:[%s915_s1 + $0x8] sm:$0xf]  ;;  %v511_v25 = vld [vmem:[%s915_s1 + $0x14] sm:$0xf0]  ;;  %v509_v26 = vld [vmem:[%s915_s1 + $0xc] sm:$0xf]  ;;  %v383_v28 = vor.u32 %v510_v20, %v382_v19  ;;  %v387_v31 = vor.u32 %v508_v21, %v384_v23 }
  0x16   :  { %319 = vmatpush.bf16.msra.mxu3 %v443_v62  ;;  %v392_v27 = vld [vmem:[%s915_s1 + $0x18] sm:$0xf0]  ;;  %v14_v29 = vld [vmem:[%s916_s0] sm:$0xff]  ;;  %v15_v30 = vld [vmem:[%s916_s0 + $0x8] sm:$0xff]  ;;  %v391_v32 = vor.u32 %v511_v25, %v390_v24 }
  0x17   :  { %v395_v33 = vor.u32 %v509_v26, %v392_v27  ;;  %v22_v34 = vpack.c.bf16 %v15_v30, %v14_v29  ;;  %v16_v35 = vld [vmem:[%s916_s0 + $0x10] sm:$0xff]  ;;  %v17_v36 = vld [vmem:[%s916_s0 + $0x18] sm:$0xff]  ;;  %v18_v38 = vld [vmem:[%s916_s0 + $0x20] sm:$0xff] }
  0x18   :  { %233 = vmatpush.bf16.msra.mxu0 %v415_v4  ;;  %v23_v37 = vpack.c.bf16 %v17_v36, %v16_v35  ;;  %v19_v39 = vld [vmem:[%s916_s0 + $0x28] sm:$0xff]  ;;  %v20_v41 = vld [vmem:[%s916_s0 + $0x30] sm:$0xff]  ;;  %v21_v42 = vld [vmem:[%s916_s0 + $0x38] sm:$0xff] }
  0x19   :  { %262 = vmatpush.bf16.msra.mxu1 %v419_v5  ;;  %291 = vmatpush.bf16.msra.mxu2 %v423_v6  ;;  %v24_v40 = vpack.c.bf16 %v19_v39, %v18_v38  ;;  %v25_v43 = vpack.c.bf16 %v21_v42, %v20_v41  ;;  %v58_v44 = vld [vmem:[%s917_s2] sm:$0xf] }
  0x1a   :  { %320 = vmatpush.bf16.msra.mxu3 %v427_v10  ;;  %v779_v45 = vperm.slane %v58_v44, 0  ;;  %v781_v46 = vperm.slane %v58_v44, 1  ;;  %v791_v51 = vperm.slane %v58_v44, 2  ;;  %v793_v52 = vperm.slane %v58_v44, 3 }
  0x1c   :  { %234 = vmatpush.bf16.msra.mxu0 %v399_v16 }
  0x1d   :  { %263 = vmatpush.bf16.msra.mxu1 %v403_v17  ;;  %292 = vmatpush.bf16.msra.mxu2 %v407_v18 }
  0x1e   :  { %321 = vmatpush.bf16.msra.mxu3 %v411_v22 }
  0x20   :  { %235 = vmatpush.bf16.msra.mxu0 %v383_v28 }
  0x21   :  { %264 = vmatpush.bf16.msra.mxu1 %v387_v31  ;;  %293 = vmatpush.bf16.msra.mxu2 %v391_v32 }
  0x22   :  { %322 = vmatpush.bf16.msra.mxu3 %v395_v33 }
  0x23   :  { %236 = vmatmul.bf16.vlgmr.msra.gmra.mxu0 %v22_v34 }
  0x24   :  { %265 = vmatmul.bf16.vlgmr.msra.gmra.mxu1 %v22_v34  ;;  %294 = vmatmul.bf16.vlgmr.msra.gmra.mxu2 %v22_v34 }
  0x25   :  { %323 = vmatmul.bf16.vlgmr.msra.gmra.mxu3 %v22_v34 }
  0x33   :  { %241 = vmatmul.bf16.gmra.mxu0 %v23_v37 }
  0x34   :  { %270 = vmatmul.bf16.gmra.mxu1 %v23_v37  ;;  %299 = vmatmul.bf16.gmra.mxu2 %v23_v37 }
  0x35   :  { %328 = vmatmul.bf16.gmra.mxu3 %v23_v37 }
  0x43   :  { %246 = vmatmul.bf16.gmra.mxu0 %v24_v40 }
  0x44   :  { %275 = vmatmul.bf16.gmra.mxu1 %v24_v40  ;;  %304 = vmatmul.bf16.gmra.mxu2 %v24_v40 }
  0x45   :  { %333 = vmatmul.bf16.gmra.mxu3 %v24_v40 }
  0x53   :  { %251 = vmatmul.bf16.gmra.mxu0 %v25_v43 }
  0x54   :  { %280 = vmatmul.bf16.gmra.mxu1 %v25_v43  ;;  %309 = vmatmul.bf16.gmra.mxu2 %v25_v43 }
  0x55   :  { %338 = vmatmul.bf16.gmra.mxu3 %v25_v43 }
  0xa0   :  { %v237_v47 = vpop.f32.mrf.mxu0 }
  0xa1   :  { %v238_v48 = vadd.f32 %v237_v47, %v779_v45  ;;  %v266_v49 = vpop.f32.mrf.mxu1 }
  0xa2   :  { %v267_v50 = vadd.f32 %v266_v49, %v781_v46 }
  0xa3   :  { %344 = vst [vmem:[%s918_s3] sm:$0xff] %v238_v48 }
  0xa4   :  { %345 = vst [vmem:[%s918_s3 + $0x8] sm:$0xff] %v267_v50 }
  0xa7   :  { %v295_v53 = vpop.f32.mrf.mxu2 }
  0xa8   :  { %v296_v54 = vadd.f32 %v295_v53, %v791_v51  ;;  %v324_v55 = vpop.f32.mrf.mxu3  ;;  %v239_v56 = vpop.f32.mrf.mxu0 }
  0xa9   :  { %v325_v57 = vadd.f32 %v324_v55, %v793_v52  ;;  %v240_v58 = vadd.f32 %v239_v56, %v779_v45  ;;  %v268_v59 = vpop.f32.mrf.mxu1 }
  0xaa   :  { %346 = vst [vmem:[%s918_s3 + $0x10] sm:$0xff] %v296_v54  ;;  %v269_v60 = vadd.f32 %v268_v59, %v781_v46 }
  0xab   :  { %347 = vst [vmem:[%s918_s3 + $0x18] sm:$0xff] %v325_v57 }
  0xac   :  { %348 = vst [vmem:[%s918_s3 + $0x20] sm:$0xff] %v240_v58 }
  0xad   :  { %349 = vst [vmem:[%s918_s3 + $0x28] sm:$0xff] %v269_v60 }
  0xaf   :  { %v297_v61 = vpop.f32.mrf.mxu2 }
  0xb0   :  { %v298_v62 = vadd.f32 %v297_v61, %v791_v51  ;;  %v326_v63 = vpop.f32.mrf.mxu3  ;;  %v242_v0 = vpop.f32.mrf.mxu0 }
  0xb1   :  { %v327_v1 = vadd.f32 %v326_v63, %v793_v52  ;;  %v243_v2 = vadd.f32 %v242_v0, %v779_v45  ;;  %v271_v3 = vpop.f32.mrf.mxu1 }
  0xb2   :  { %350 = vst [vmem:[%s918_s3 + $0x30] sm:$0xff] %v298_v62  ;;  %v272_v4 = vadd.f32 %v271_v3, %v781_v46 }
  0xb3   :  { %351 = vst [vmem:[%s918_s3 + $0x38] sm:$0xff] %v327_v1 }
  0xb4   :  { %352 = vst [vmem:[%s918_s3 + $0x40] sm:$0xff] %v243_v2 }
  0xb5   :  { %353 = vst [vmem:[%s918_s3 + $0x48] sm:$0xff] %v272_v4 }
  0xb7   :  { %v300_v5 = vpop.f32.mrf.mxu2 }
  0xb8   :  { %v301_v6 = vadd.f32 %v300_v5, %v791_v51  ;;  %v329_v7 = vpop.f32.mrf.mxu3  ;;  %v244_v8 = vpop.f32.mrf.mxu0 }
  0xb9   :  { %v330_v9 = vadd.f32 %v329_v7, %v793_v52  ;;  %v245_v10 = vadd.f32 %v244_v8, %v779_v45  ;;  %v273_v11 = vpop.f32.mrf.mxu1 }
  0xba   :  { %354 = vst [vmem:[%s918_s3 + $0x50] sm:$0xff] %v301_v6  ;;  %v274_v12 = vadd.f32 %v273_v11, %v781_v46 }
  0xbb   :  { %355 = vst [vmem:[%s918_s3 + $0x58] sm:$0xff] %v330_v9 }
  0xbc   :  { %356 = vst [vmem:[%s918_s3 + $0x60] sm:$0xff] %v245_v10 }
  0xbd   :  { %357 = vst [vmem:[%s918_s3 + $0x68] sm:$0xff] %v274_v12 }
  0xbf   :  { %v302_v13 = vpop.f32.mrf.mxu2 }
  0xc0   :  { %v303_v14 = vadd.f32 %v302_v13, %v791_v51  ;;  %v331_v15 = vpop.f32.mrf.mxu3  ;;  %v247_v16 = vpop.f32.mrf.mxu0 }
  0xc1   :  { %v332_v17 = vadd.f32 %v331_v15, %v793_v52  ;;  %v248_v18 = vadd.f32 %v247_v16, %v779_v45  ;;  %v276_v19 = vpop.f32.mrf.mxu1 }
  0xc2   :  { %358 = vst [vmem:[%s918_s3 + $0x70] sm:$0xff] %v303_v14  ;;  %v277_v20 = vadd.f32 %v276_v19, %v781_v46 }
  0xc3   :  { %359 = vst [vmem:[%s918_s3 + $0x78] sm:$0xff] %v332_v17 }
  0xc4   :  { %360 = vst [vmem:[%s918_s3 + $0x80] sm:$0xff] %v248_v18 }
  0xc5   :  { %361 = vst [vmem:[%s918_s3 + $0x88] sm:$0xff] %v277_v20 }
  0xc7   :  { %v305_v21 = vpop.f32.mrf.mxu2 }
  0xc8   :  { %v306_v22 = vadd.f32 %v305_v21, %v791_v51  ;;  %v334_v23 = vpop.f32.mrf.mxu3  ;;  %v249_v24 = vpop.f32.mrf.mxu0 }
  0xc9   :  { %v335_v25 = vadd.f32 %v334_v23, %v793_v52  ;;  %v250_v26 = vadd.f32 %v249_v24, %v779_v45  ;;  %v278_v27 = vpop.f32.mrf.mxu1 }
  0xca   :  { %362 = vst [vmem:[%s918_s3 + $0x90] sm:$0xff] %v306_v22  ;;  %v279_v28 = vadd.f32 %v278_v27, %v781_v46 }
  0xcb   :  { %363 = vst [vmem:[%s918_s3 + $0x98] sm:$0xff] %v335_v25 }
  0xcc   :  { %364 = vst [vmem:[%s918_s3 + $0xa0] sm:$0xff] %v250_v26 }
  0xcd   :  { %365 = vst [vmem:[%s918_s3 + $0xa8] sm:$0xff] %v279_v28 }
  0xcf   :  { %v307_v29 = vpop.f32.mrf.mxu2 }
  0xd0   :  { %v308_v30 = vadd.f32 %v307_v29, %v791_v51  ;;  %v336_v31 = vpop.f32.mrf.mxu3  ;;  %v252_v32 = vpop.f32.mrf.mxu0 }
  0xd1   :  { %v337_v33 = vadd.f32 %v336_v31, %v793_v52  ;;  %v253_v34 = vadd.f32 %v252_v32, %v779_v45  ;;  %v281_v35 = vpop.f32.mrf.mxu1 }
  0xd2   :  { %366 = vst [vmem:[%s918_s3 + $0xb0] sm:$0xff] %v308_v30  ;;  %v282_v36 = vadd.f32 %v281_v35, %v781_v46 }
  0xd3   :  { %367 = vst [vmem:[%s918_s3 + $0xb8] sm:$0xff] %v337_v33 }
  0xd4   :  { %368 = vst [vmem:[%s918_s3 + $0xc0] sm:$0xff] %v253_v34 }
  0xd5   :  { %369 = vst [vmem:[%s918_s3 + $0xc8] sm:$0xff] %v282_v36 }
  0xd7   :  { %v310_v37 = vpop.f32.mrf.mxu2 }
  0xd8   :  { %v311_v38 = vadd.f32 %v310_v37, %v791_v51  ;;  %v339_v39 = vpop.f32.mrf.mxu3  ;;  %v254_v40 = vpop.f32.mrf.mxu0 }
  0xd9   :  { %v340_v41 = vadd.f32 %v339_v39, %v793_v52  ;;  %v255_v42 = vadd.f32 %v254_v40, %v779_v45  ;;  %v283_v43 = vpop.f32.mrf.mxu1 }
  0xda   :  { %370 = vst [vmem:[%s918_s3 + $0xd0] sm:$0xff] %v311_v38  ;;  %v284_v44 = vadd.f32 %v283_v43, %v781_v46 }
  0xdb   :  { %371 = vst [vmem:[%s918_s3 + $0xd8] sm:$0xff] %v340_v41 }
  0xdc   :  { %372 = vst [vmem:[%s918_s3 + $0xe0] sm:$0xff] %v255_v42 }
  0xdd   :  { %373 = vst [vmem:[%s918_s3 + $0xe8] sm:$0xff] %v284_v44 }
  0xdf   :  { %v312_v45 = vpop.f32.mrf.mxu2 }
  0xe0   :  { %v313_v47 = vadd.f32 %v312_v45, %v791_v51  ;;  %v341_v48 = vpop.f32.mrf.mxu3 }
  0xe1   :  { %v342_v49 = vadd.f32 %v341_v48, %v793_v52 }
  0xe2   :  { %374 = vst [vmem:[%s918_s3 + $0xf0] sm:$0xff] %v313_v47 }
  0xe3   :  { %375 = vst [vmem:[%s918_s3 + $0xf8] sm:$0xff] %v342_v49 }

// kernel: run.9
= control target key start
LH: loop header
LB: loop body
LE: loop exit
PB: predicated region body
PF: predicated region fallthrough
CT: control target
= control target key end

     0   :  { %s1206_s12 = smov 0   ;;  %s1208_s13 = smov 0   ;;  %s1646_s0 = inlined_call_operand.vmem [shape: f32[8,8,512], index: 0, kind: input, shape index: {}]   ;;  %s1647_s1 = inlined_call_operand.vmem [shape: f32[8,8,256], index: 1, kind: input, shape index: {}]   ;;  %s1648_s2 = inlined_call_operand.vmem [shape: bf16[128,768], index: 2, kind: input, shape index: {}]   ;;  %s1649_s3 = inlined_call_operand.vmem [shape: f32[8,8,128], index: 3, kind: output, shape index: {}]  }
   0x1   :  { %s1210_s14 = smov 0  }
   0x2 LB: > { %s22_s15 = sadd.s32 1, %s1179_s13  ;;  %p853_p0 = scmp.ge.s32.totalorder %s1183_s14, 1  ;;  %s1183_s14 = sphi %s1210_s14, %s13_s14   ;;  %s1179_s13 = sphi %s1208_s13, %s1661_s13   ;;  %s1175_s12 = sphi %s1206_s12, %s1660_s12  }
   0x3   : > { %p23_p1 = scmp.ge.s32.totalorder %s22_s15, 8  ;;  %p173_p2 = scmp.lt.s32.totalorder %s1183_s14, 9 }
   0x5   : > { %s1663_s15 = smov (%p23_p1, %s22_s15), 0  ;;  %p174_p3 = pnand %p853_p0, %p173_p2 }
   0x6   : > { %p212_p4 = scmp.lt.s32.totalorder (!%p174_p3), %s1175_s12, 7  ;;  %p859_p5 = scmp.ne.s32.totalorder (!%p174_p3), %s1175_s12, 0 }
   0x7   : > { %177 = sbr.rel (%p174_p3) target bundleno = 262 (0x106), region = 32 }
   0xc   : > { %s213_s16 = scalar_select %p212_p4, %s1175_s12, 7 }
   0xd   : > { %240 = sbr.rel (%p859_p5) target bundleno = 21 (0x15), region = 36 }
   0xe   : > { %s1060_s17 = sshll.u32 %s213_s16, 5  ;;  %s1061_s18 = sshll.u32 %s213_s16, 4 }
   0xf   : > { %s1227_s21 = scalar_lea.vmem %s1646_s0, %s1060_s17  ;;  %s1232_s24 = scalar_lea.vmem %s1647_s1, %s1061_s18 }
  0x10   : > { %s858_s25 = sshll.u32 %s213_s16, 3 }
  0x11   : > { %s1237_s28 = scalar_lea.vmem %s1649_s3, %s858_s25 }
  0x12   : > { %v1185_v0 = vmov 0.0  }
  0x13   : > { %241 = vst [vmem:[#allocation2] sm:$0xff] %v1185_v0 }
  0x14   : > { %242 = vst [vmem:[#allocation3] sm:$0xff] %v1185_v0 }
  0x15 PF: > { %v1030_v1 = vld [vmem:[%s1648_s2 + $0x150] sm:$0xf]  ;;  %v1107_v2 = vld [vmem:[%s1648_s2 + $0x164] sm:$0xf0]  ;;  %v1104_v3 = vld [vmem:[%s1648_s2 + $0x154] sm:$0xf] }
  0x16   : > { %v1031_v4 = vor.u32 %v1107_v2, %v1030_v1  ;;  %v1032_v5 = vld [vmem:[%s1648_s2 + $0x168] sm:$0xf0]  ;;  %v1006_v6 = vld [vmem:[%s1648_s2 + $0x120] sm:$0xf]  ;;  %v1101_v7 = vld [vmem:[%s1648_s2 + $0x134] sm:$0xf0] }
  0x17   : > { %v1035_v8 = vor.u32 %v1104_v3, %v1032_v5  ;;  %v1098_v9 = vld [vmem:[%s1648_s2 + $0x124] sm:$0xf]  ;;  %v1008_v10 = vld [vmem:[%s1648_s2 + $0x138] sm:$0xf0]  ;;  %v1007_v11 = vor.u32 %v1101_v7, %v1006_v6  ;;  %v982_v13 = vld [vmem:[%s1648_s2 + $0xf0] sm:$0xf] }
  0x18   : > { %534 = vmatpush.bf16.msra.mxu0 %v1031_v4  ;;  %v1011_v12 = vor.u32 %v1098_v9, %v1008_v10  ;;  %v1095_v14 = vld [vmem:[%s1648_s2 + $0x104] sm:$0xf0]  ;;  %v1092_v15 = vld [vmem:[%s1648_s2 + $0xf4] sm:$0xf]  ;;  %v984_v16 = vld [vmem:[%s1648_s2 + $0x108] sm:$0xf0] }
  0x19   : > { %547 = vmatpush.bf16.msra.mxu1 %v1035_v8  ;;  %v1105_v17 = vld [vmem:[%s1648_s2 + $0x15c] sm:$0xf]  ;;  %v1040_v18 = vld [vmem:[%s1648_s2 + $0x170] sm:$0xf0]  ;;  %v983_v20 = vor.u32 %v1095_v14, %v982_v13  ;;  %v1099_v21 = vld [vmem:[%s1648_s2 + $0x12c] sm:$0xf]  ;;  %v987_v23 = vor.u32 %v1092_v15, %v984_v16 }
  0x1a   : > { %v1043_v19 = vor.u32 %v1105_v17, %v1040_v18  ;;  %v1016_v22 = vld [vmem:[%s1648_s2 + $0x140] sm:$0xf0]  ;;  %v958_v24 = vld [vmem:[%s1648_s2 + $0xc0] sm:$0xf]  ;;  %v1089_v25 = vld [vmem:[%s1648_s2 + $0xd4] sm:$0xf0] }
  0x1b   : > { %v1086_v26 = vld [vmem:[%s1648_s2 + $0xc4] sm:$0xf]  ;;  %v1019_v27 = vor.u32 %v1099_v21, %v1016_v22  ;;  %v960_v28 = vld [vmem:[%s1648_s2 + $0xd8] sm:$0xf0]  ;;  %v992_v30 = vld [vmem:[%s1648_s2 + $0x110] sm:$0xf0]  ;;  %v959_v33 = vor.u32 %v1089_v25, %v958_v24 }
  0x1c   : > { %535 = vmatpush.bf16.msra.mxu0 %v1007_v11  ;;  %573 = vmatpush.bf16.msra.mxu3 %v1043_v19  ;;  %v1093_v29 = vld [vmem:[%s1648_s2 + $0xfc] sm:$0xf]  ;;  %v1038_v31 = vld [vmem:[%s1648_s2 + $0x158] sm:$0xf]  ;;  %v1108_v32 = vld [vmem:[%s1648_s2 + $0x16c] sm:$0xf0]  ;;  %v963_v37 = vor.u32 %v1086_v26, %v960_v28 }
  0x1d   : > { %548 = vmatpush.bf16.msra.mxu1 %v1011_v12  ;;  %v934_v34 = vld [vmem:[%s1648_s2 + $0x90] sm:$0xf]  ;;  %v1083_v35 = vld [vmem:[%s1648_s2 + $0xa4] sm:$0xf0]  ;;  %v1039_v36 = vor.u32 %v1108_v32, %v1038_v31  ;;  %v1080_v38 = vld [vmem:[%s1648_s2 + $0x94] sm:$0xf]  ;;  %v995_v40 = vor.u32 %v1093_v29, %v992_v30 }
  0x1e   : > { %v936_v39 = vld [vmem:[%s1648_s2 + $0xa8] sm:$0xf0]  ;;  %v1014_v41 = vld [vmem:[%s1648_s2 + $0x128] sm:$0xf]  ;;  %v968_v43 = vld [vmem:[%s1648_s2 + $0xe0] sm:$0xf0]  ;;  %v935_v46 = vor.u32 %v1083_v35, %v934_v34 }
  0x1f   : > { %560 = vmatpush.bf16.msra.mxu2 %v1039_v36  ;;  %v1087_v42 = vld [vmem:[%s1648_s2 + $0xcc] sm:$0xf]  ;;  %v1102_v44 = vld [vmem:[%s1648_s2 + $0x13c] sm:$0xf0]  ;;  %v1077_v48 = vld [vmem:[%s1648_s2 + $0x74] sm:$0xf0]  ;;  %v939_v49 = vor.u32 %v1080_v38, %v936_v39 }
  0x20   : > { %536 = vmatpush.bf16.msra.mxu0 %v983_v20  ;;  %574 = vmatpush.bf16.msra.mxu3 %v1019_v27  ;;  %v1015_v45 = vor.u32 %v1102_v44, %v1014_v41  ;;  %v910_v47 = vld [vmem:[%s1648_s2 + $0x60] sm:$0xf]  ;;  %v1074_v50 = vld [vmem:[%s1648_s2 + $0x64] sm:$0xf]  ;;  %v912_v51 = vld [vmem:[%s1648_s2 + $0x78] sm:$0xf0]  ;;  %v971_v52 = vor.u32 %v1087_v42, %v968_v43 }
  0x21   : > { %549 = vmatpush.bf16.msra.mxu1 %v987_v23  ;;  %v1081_v53 = vld [vmem:[%s1648_s2 + $0x9c] sm:$0xf]  ;;  %v944_v54 = vld [vmem:[%s1648_s2 + $0xb0] sm:$0xf0]  ;;  %v990_v55 = vld [vmem:[%s1648_s2 + $0xf8] sm:$0xf]  ;;  %v911_v58 = vor.u32 %v1077_v48, %v910_v47  ;;  %v915_v61 = vor.u32 %v1074_v50, %v912_v51 }
  0x22   : > { %v1096_v56 = vld [vmem:[%s1648_s2 + $0x10c] sm:$0xf0]  ;;  %v966_v60 = vld [vmem:[%s1648_s2 + $0xc8] sm:$0xf]  ;;  %v1068_v63 = vld [vmem:[%s1648_s2 + $0x34] sm:$0xf]  ;;  %v947_v0 = vor.u32 %v1081_v53, %v944_v54 }
  0x23   : > { %561 = vmatpush.bf16.msra.mxu2 %v1015_v45  ;;  %v991_v57 = vor.u32 %v1096_v56, %v990_v55  ;;  %v886_v59 = vld [vmem:[%s1648_s2 + $0x30] sm:$0xf]  ;;  %v1071_v62 = vld [vmem:[%s1648_s2 + $0x44] sm:$0xf0]  ;;  %v1090_v1 = vld [vmem:[%s1648_s2 + $0xdc] sm:$0xf0] }
  0x24   : > { %537 = vmatpush.bf16.msra.mxu0 %v959_v33  ;;  %575 = vmatpush.bf16.msra.mxu3 %v995_v40  ;;  %v888_v2 = vld [vmem:[%s1648_s2 + $0x48] sm:$0xf0]  ;;  %v920_v4 = vld [vmem:[%s1648_s2 + $0x80] sm:$0xf0]  ;;  %v967_v5 = vor.u32 %v1090_v1, %v966_v60  ;;  %v942_v6 = vld [vmem:[%s1648_s2 + $0x98] sm:$0xf]  ;;  %v887_v8 = vor.u32 %v1071_v62, %v886_v59 }
  0x25   : > { %550 = vmatpush.bf16.msra.mxu1 %v963_v37  ;;  %v1075_v3 = vld [vmem:[%s1648_s2 + $0x6c] sm:$0xf]  ;;  %v1084_v7 = vld [vmem:[%s1648_s2 + $0xac] sm:$0xf0]  ;;  %v862_v9 = vld [vmem:[%s1648_s2] sm:$0xf]  ;;  %v891_v10 = vor.u32 %v1068_v63, %v888_v2 }
  0x26   : > { %v1065_v11 = vld [vmem:[%s1648_s2 + $0x14] sm:$0xf0]  ;;  %v1062_v12 = vld [vmem:[%s1648_s2 + $0x4] sm:$0xf]  ;;  %v864_v13 = vld [vmem:[%s1648_s2 + $0x18] sm:$0xf0]  ;;  %v923_v14 = vor.u32 %v1075_v3, %v920_v4  ;;  %v943_v18 = vor.u32 %v1084_v7, %v942_v6 }
  0x27   : > { %562 = vmatpush.bf16.msra.mxu2 %v991_v57  ;;  %v1046_v15 = vld [vmem:[%s1648_s2 + $0x160] sm:$0xf]  ;;  %v1109_v16 = vld [vmem:[%s1648_s2 + $0x174] sm:$0xf0]  ;;  %v1106_v17 = vld [vmem:[%s1648_s2 + $0x164] sm:$0xf]  ;;  %v863_v22 = vor.u32 %v1065_v11, %v862_v9  ;;  %v867_v26 = vor.u32 %v1062_v12, %v864_v13 }
  0x28   : > { %538 = vmatpush.bf16.msra.mxu0 %v935_v46  ;;  %576 = vmatpush.bf16.msra.mxu3 %v971_v52  ;;  %v1048_v19 = vld [vmem:[%s1648_s2 + $0x178] sm:$0xf0]  ;;  %v896_v21 = vld [vmem:[%s1648_s2 + $0x50] sm:$0xf0]  ;;  %v243_v23 = vld [vmem:[#allocation2] sm:$0xff]  ;;  %v1047_v27 = vor.u32 %v1109_v16, %v1046_v15 }
  0x29   : > { %551 = vmatpush.bf16.msra.mxu1 %v939_v49  ;;  %v1069_v20 = vld [vmem:[%s1648_s2 + $0x3c] sm:$0xf]  ;;  %v918_v24 = vld [vmem:[%s1648_s2 + $0x68] sm:$0xf]  ;;  %v1078_v25 = vld [vmem:[%s1648_s2 + $0x7c] sm:$0xf0]  ;;  %v1051_v28 = vor.u32 %v1106_v17, %v1048_v19  ;;  %v1434_v33 = vpack.c.bf16 %v243_v23, %v243_v23 }
  0x2a   : > { %v1022_v29 = vld [vmem:[%s1648_s2 + $0x130] sm:$0xf]  ;;  %v1103_v30 = vld [vmem:[%s1648_s2 + $0x144] sm:$0xf0]  ;;  %v1100_v31 = vld [vmem:[%s1648_s2 + $0x134] sm:$0xf]  ;;  %v899_v32 = vor.u32 %v1069_v20, %v896_v21  ;;  %v919_v37 = vor.u32 %v1078_v25, %v918_v24 }
  0x2b   : > { %563 = vmatpush.bf16.msra.mxu2 %v967_v5  ;;  %v1024_v34 = vld [vmem:[%s1648_s2 + $0x148] sm:$0xf0]  ;;  %v872_v36 = vld [vmem:[%s1648_s2 + $0x20] sm:$0xf0]  ;;  %v894_v38 = vld [vmem:[%s1648_s2 + $0x38] sm:$0xf]  ;;  %v1023_v40 = vor.u32 %v1103_v30, %v1022_v29 }
  0x2c   : > { %539 = vmatpush.bf16.msra.mxu0 %v911_v58  ;;  %577 = vmatpush.bf16.msra.mxu3 %v947_v0  ;;  %v1063_v35 = vld [vmem:[%s1648_s2 + $0xc] sm:$0xf]  ;;  %v1072_v39 = vld [vmem:[%s1648_s2 + $0x4c] sm:$0xf0]  ;;  %v1027_v41 = vor.u32 %v1100_v31, %v1024_v34  ;;  %v998_v42 = vld [vmem:[%s1648_s2 + $0x100] sm:$0xf] }
  0x2d   : > { %552 = vmatpush.bf16.msra.mxu1 %v915_v61  ;;  %v1097_v43 = vld [vmem:[%s1648_s2 + $0x114] sm:$0xf0]  ;;  %v875_v44 = vor.u32 %v1063_v35, %v872_v36  ;;  %v1094_v45 = vld [vmem:[%s1648_s2 + $0x104] sm:$0xf]  ;;  %v1000_v46 = vld [vmem:[%s1648_s2 + $0x118] sm:$0xf0]  ;;  %v895_v47 = vor.u32 %v1072_v39, %v894_v38 }
  0x2e   : > { %v870_v48 = vld [vmem:[%s1648_s2 + $0x8] sm:$0xf]  ;;  %v1066_v49 = vld [vmem:[%s1648_s2 + $0x1c] sm:$0xf0]  ;;  %v999_v50 = vor.u32 %v1097_v43, %v998_v42  ;;  %v1003_v51 = vor.u32 %v1094_v45, %v1000_v46  ;;  %v974_v52 = vld [vmem:[%s1648_s2 + $0xd0] sm:$0xf] }
  0x2f   : > { %564 = vmatpush.bf16.msra.mxu2 %v943_v18  ;;  %v1091_v53 = vld [vmem:[%s1648_s2 + $0xe4] sm:$0xf0]  ;;  %v1088_v54 = vld [vmem:[%s1648_s2 + $0xd4] sm:$0xf]  ;;  %v976_v55 = vld [vmem:[%s1648_s2 + $0xe8] sm:$0xf0]  ;;  %v871_v56 = vor.u32 %v1066_v49, %v870_v48 }
  0x30   : > { %540 = vmatpush.bf16.msra.mxu0 %v887_v8  ;;  %578 = vmatpush.bf16.msra.mxu3 %v923_v14  ;;  %v975_v57 = vor.u32 %v1091_v53, %v974_v52  ;;  %v979_v58 = vor.u32 %v1088_v54, %v976_v55  ;;  %v950_v59 = vld [vmem:[%s1648_s2 + $0xa0] sm:$0xf]  ;;  %v1085_v60 = vld [vmem:[%s1648_s2 + $0xb4] sm:$0xf0]  ;;  %v1082_v61 = vld [vmem:[%s1648_s2 + $0xa4] sm:$0xf] }
  0x31   : > { %553 = vmatpush.bf16.msra.mxu1 %v891_v10  ;;  %v952_v62 = vld [vmem:[%s1648_s2 + $0xb8] sm:$0xf0]  ;;  %v951_v63 = vor.u32 %v1085_v60, %v950_v59  ;;  %v926_v1 = vld [vmem:[%s1648_s2 + $0x70] sm:$0xf]  ;;  %v1079_v2 = vld [vmem:[%s1648_s2 + $0x84] sm:$0xf0] }
  0x32   : > { %v955_v0 = vor.u32 %v1082_v61, %v952_v62  ;;  %v1076_v3 = vld [vmem:[%s1648_s2 + $0x74] sm:$0xf]  ;;  %v928_v4 = vld [vmem:[%s1648_s2 + $0x88] sm:$0xf0]  ;;  %v927_v5 = vor.u32 %v1079_v2, %v926_v1  ;;  %v902_v7 = vld [vmem:[%s1648_s2 + $0x40] sm:$0xf] }
  0x33   : > { %565 = vmatpush.bf16.msra.mxu2 %v919_v37  ;;  %v931_v6 = vor.u32 %v1076_v3, %v928_v4  ;;  %v1073_v8 = vld [vmem:[%s1648_s2 + $0x54] sm:$0xf0]  ;;  %v1070_v9 = vld [vmem:[%s1648_s2 + $0x44] sm:$0xf]  ;;  %v904_v10 = vld [vmem:[%s1648_s2 + $0x58] sm:$0xf0] }
  0x34   : > { %541 = vmatpush.bf16.msra.mxu0 %v863_v22  ;;  %579 = vmatpush.bf16.msra.mxu3 %v899_v32  ;;  %v903_v11 = vor.u32 %v1073_v8, %v902_v7  ;;  %v907_v12 = vor.u32 %v1070_v9, %v904_v10  ;;  %v878_v13 = vld [vmem:[%s1648_s2 + $0x10] sm:$0xf]  ;;  %v1067_v14 = vld [vmem:[%s1648_s2 + $0x24] sm:$0xf0]  ;;  %v1064_v15 = vld [vmem:[%s1648_s2 + $0x14] sm:$0xf] }
  0x35   : > { %554 = vmatpush.bf16.msra.mxu1 %v867_v26  ;;  %v880_v16 = vld [vmem:[%s1648_s2 + $0x28] sm:$0xf0]  ;;  %v879_v17 = vor.u32 %v1067_v14, %v878_v13  ;;  %v612_v21 = vld [vmem:[%s1227_s21] sm:$0xff]  ;;  %v614_v35 = vld [vmem:[%s1227_s21 + $0x10] sm:$0xff] }
  0x36   : > { %v883_v18 = vor.u32 %v1064_v15, %v880_v16  ;;  %v613_v22 = vld [vmem:[%s1227_s21 + $0x8] sm:$0xff]  ;;  %v696_v42 = vld [vmem:[%s1232_s24] sm:$0xff] }
  0x37   : > { %542 = vmatmul.bf16.vlgmr.msra.gmra.mxu0 %v1434_v33  ;;  %566 = vmatpush.bf16.msra.mxu2 %v895_v47  ;;  %v697_v46 = vld [vmem:[%s1232_s24 + $0x8] sm:$0xff] }
  0x38   : > { %586 = vmatpush.bf16.msrb.mxu0 %v1047_v27  ;;  %555 = vmatmul.bf16.vlgmr.msra.gmra.mxu1 %v1434_v33  ;;  %v615_v27 = vld [vmem:[%s1227_s21 + $0x18] sm:$0xff] }
  0x39   : > { %599 = vmatpush.bf16.msrb.mxu1 %v1051_v28  ;;  %580 = vmatpush.bf16.msra.mxu3 %v875_v44 }
  0x3b   : > { %567 = vmatpush.bf16.msra.mxu2 %v871_v56 }
  0x3c   : > { %587 = vmatpush.bf16.msrb.mxu0 %v1023_v40  ;;  %581 = vmatmul.bf16.vlgmr.msra.gmra.mxu3 %v1434_v33 }
  0x3d   : > { %600 = vmatpush.bf16.msrb.mxu1 %v1027_v41 }
  0x3e   : > { %568 = vmatmul.bf16.vlgmr.msra.gmra.mxu2 %v1434_v33 }
  0x40   : > { %588 = vmatpush.bf16.msrb.mxu0 %v999_v50 }
  0x41   : > { %601 = vmatpush.bf16.msrb.mxu1 %v1003_v51 }
  0x44   : > { %589 = vmatpush.bf16.msrb.mxu0 %v975_v57 }
  0x45   : > { %602 = vmatpush.bf16.msrb.mxu1 %v979_v58 }
  0x48   : > { %590 = vmatpush.bf16.msrb.mxu0 %v951_v63 }
  0x49   : > { %603 = vmatpush.bf16.msrb.mxu1 %v955_v0 }
  0x4c   : > { %591 = vmatpush.bf16.msrb.mxu0 %v927_v5 }
  0x4d   : > { %604 = vmatpush.bf16.msrb.mxu1 %v931_v6 }
  0x50   : > { %592 = vmatpush.bf16.msrb.mxu0 %v903_v11 }
  0x51   : > { %605 = vmatpush.bf16.msrb.mxu1 %v907_v12 }
  0x54   : > { %593 = vmatpush.bf16.msrb.mxu0 %v879_v17 }
  0x55   : > { %606 = vmatpush.bf16.msrb.mxu1 %v883_v18 }
  0x57   : > { %594 = vmatmul.bf16.vlgmr.msrb.gmra.mxu0 %v1434_v33 }
  0x58   : > { %607 = vmatmul.bf16.vlgmr.msrb.gmra.mxu1 %v1434_v33 }
  0xb4   : > { %v543_v19 = vpop.f32.mrf.mxu0 }
  0xb5   : > { %v556_v20 = vpop.f32.mrf.mxu1  ;;  %v616_v24 = vadd.f32 %v612_v21, %v543_v19 }
  0xb6   : > { %v617_v26 = vadd.f32 %v613_v22, %v556_v20 }
  0xb7   : > { %v1052_v29 = vmul.f32 -1.442695, %v616_v24 }
  0xb8   : > { %v1053_v30 = vmul.f32 -1.442695, %v617_v26 }
  0xb9   : > { %1135 = vpow2.f32 %v1052_v29 }
  0xba   : > { %1137 = vpow2.f32 %v1053_v30 }
  0xbc   : > { %v545_v23 = vpop.f32.mrf.mxu0 }
  0xbd   : > { %v558_v25 = vpop.f32.mrf.mxu1 }
  0xbf   : > { %v582_v28 = vpop.f32.mrf.mxu3  ;;  %v1136_v36 = vpop.eup %1135 }
  0xc0   : > { %v619_v31 = vadd.f32 %v615_v27, %v582_v28  ;;  %v1138_v37 = vpop.eup %1137  ;;  %v632_v40 = vadd.f32 1.0, %v1136_v36 }
  0xc1   : > { %v569_v32 = vpop.f32.mrf.mxu2  ;;  %v1539_v41 = vadd.f32 1.0, %v1138_v37 }
  0xc2   : > { %v1055_v33 = vmul.f32 -1.442695, %v619_v31  ;;  %v618_v38 = vadd.f32 %v614_v35, %v569_v32  ;;  %v645_v6 = vand.u32 2147483647, %v632_v40  ;;  %v647_v7 = vand.u32 2147483648, %v632_v40 }
  0xc3   : > { %v660_v8 = vand.u32 2147483647, %v1539_v41  ;;  %vm641_vm0 = vweird.f32 %v632_v40  ;;  %vm656_vm2 = vweird.f32 %v1539_v41  ;;  %v662_v12 = vand.u32 2147483648, %v1539_v41 }
  0xc4   : > { %1139 = vpow2.f32 %v1055_v33  ;;  %v1054_v44 = vmul.f32 -1.442695, %v618_v38  ;;  %vm1573_vm3 = vcmp.eq.f32.partialorder %v645_v6, 8.507059e+37  ;;  %v648_v17 = vor.u32 1.1754944e-38, %v647_v7 }
  0xc5   : > { %1141 = vrcp.f32 %v632_v40  ;;  %vm1577_vm4 = vcmp.eq.f32.partialorder %v660_v8, 8.507059e+37 }
  0xc6   : > { %1143 = vrcp.f32 %v1539_v41 }
  0xc7   : > { %v584_v34 = vpop.f32.mrf.mxu3  ;;  %1145 = vpow2.f32 %v1054_v44 }
  0xc9   : > { %v571_v39 = vpop.f32.mrf.mxu2 }
  0xca   : > { %v1140_v43 = vpop.eup %1139 }
  0xcb   : > { %v1544_v49 = vadd.f32 1.0, %v1140_v43  ;;  %v1547_v53 = vpop.eup %1141 }
  0xcc   : > { %v1549_v54 = vpop.eup %1143  ;;  %v637_v58 = vmul.f32 %v1547_v53, %v632_v40  ;;  %vm642_vm1 = vweird.f32 %v1547_v53 }
  0xcd   : > { %v1146_v56 = vpop.eup %1145  ;;  %v652_v61 = vmul.f32 %v1549_v54, %v1539_v41  ;;  %vm1581_vm5 = vmor %vm641_vm0, %vm642_vm1  ;;  %vm657_vm6 = vweird.f32 %v1549_v54  ;;  %vm686_vm7 = vweird.f32 %v1544_v49  ;;  %v690_v24 = vand.u32 2147483647, %v1544_v49 }
  0xce   : > { %v1556_v62 = vadd.f32 1.0, %v1146_v56  ;;  %v638_v1 = vsub.f32 1.0, %v637_v58  ;;  %v692_v27 = vand.u32 2147483648, %v1544_v49  ;;  %vm1602_vm10 = vmor %vm656_vm2, %vm657_vm6  ;;  %v663_v41 = vor.u32 1.1754944e-38, %v662_v12 }
  0xcf   : > { %v653_v4 = vsub.f32 1.0, %v652_v61  ;;  %vm691_vm2 = vcmp.eq.f32.partialorder %v690_v24, 8.507059e+37 }
  0xd0   : > { %v639_v5 = vmul.f32 %v1547_v53, %v638_v1  ;;  %v675_v1 = vand.u32 2147483647, %v1556_v62 }
  0xd1   : > { %v654_v11 = vmul.f32 %v1549_v54, %v653_v4 }
  0xd2   : > { %v640_v15 = vadd.f32 %v1547_v53, %v639_v5 }
  0xd3   : > { %v655_v23 = vadd.f32 %v1549_v54, %v654_v11 }
  0xd4   : > { %v595_v45 = vpop.f32.mrf.mxu0  ;;  %v644_v30 = vsel %vm1581_vm5, %v1547_v53, %v640_v15  ;;  %vm671_vm5 = vweird.f32 %v1556_v62 }
  0xd5   : > { %v698_v47 = vadd.f32 %v696_v42, %v595_v45  ;;  %v608_v48 = vpop.f32.mrf.mxu1  ;;  %v649_v40 = vsel %vm1573_vm3, %v648_v17, %v644_v30  ;;  %v659_v44 = vsel %vm1602_vm10, %v1549_v54, %v655_v23 }
  0xd6   : > { %v699_v51 = vadd.f32 %v697_v46, %v608_v48  ;;  %v664_v54 = vsel %vm1577_vm4, %v663_v41, %v659_v44 }
  0xd7   : > { %v1056_v50 = vmul.f32 -1.442695, %v698_v47  ;;  %v693_v47 = vor.u32 1.1754944e-38, %v692_v27 }
  0xd8   : > { %v1057_v52 = vmul.f32 -1.442695, %v699_v51 }
  0xd9   : > { %1147 = vpow2.f32 %v1056_v50  ;;  %v244_v50 = vld [vmem:[#allocation3] sm:$0xff] }
  0xda   : > { %1149 = vrcp.f32 %v1544_v49 }
  0xdb   : > { %1151 = vpow2.f32 %v1057_v52 }
  0xdc   : > { %v597_v55 = vpop.f32.mrf.mxu0 }
  0xdd   : > { %v610_v57 = vpop.f32.mrf.mxu1 }
  0xdf   : > { %v1148_v59 = vpop.eup %1147 }
  0xe0   : > { %v1552_v60 = vpop.eup %1149  ;;  %v706_v63 = vadd.f32 1.0, %v1148_v59 }
  0xe1   : > { %v1152_v0 = vpop.eup %1151  ;;  %v682_v2 = vmul.f32 %v1552_v60, %v1544_v49  ;;  %vm687_vm9 = vweird.f32 %v1552_v60 }
  0xe2   : > { %1153 = vrcp.f32 %v706_v63  ;;  %v1560_v3 = vadd.f32 1.0, %v1152_v0  ;;  %v719_v25 = vand.u32 2147483648, %v706_v63  ;;  %v717_v29 = vand.u32 2147483647, %v706_v63  ;;  %vm1615_vm14 = vmor %vm686_vm7, %vm687_vm9 }
  0xe3   : > { %1155 = vrcp.f32 %v1556_v62  ;;  %v683_v9 = vsub.f32 1.0, %v682_v2  ;;  %vm713_vm11 = vweird.f32 %v706_v63  ;;  %vm676_vm7 = vcmp.eq.f32.partialorder %v675_v1, 8.507059e+37 }
  0xe4   : > { %1157 = vrcp.f32 %v1560_v3  ;;  %v734_v36 = vand.u32 2147483648, %v1560_v3  ;;  %v720_v37 = vor.u32 1.1754944e-38, %v719_v25  ;;  %v732_v39 = vand.u32 2147483647, %v1560_v3 }
  0xe5   : > { %v684_v21 = vmul.f32 %v1552_v60, %v683_v9  ;;  %vm718_vm15 = vcmp.eq.f32.partialorder %v717_v29, 8.507059e+37  ;;  %vm728_vm0 = vweird.f32 %v1560_v3 }
  0xe6   : > { %v735_v49 = vor.u32 1.1754944e-38, %v734_v36  ;;  %vm733_vm3 = vcmp.eq.f32.partialorder %v732_v39, 8.507059e+37 }
  0xe7   : > { %v685_v34 = vadd.f32 %v1552_v60, %v684_v21 }
  0xe8   : > { %v1154_v10 = vpop.eup %1153 }
  0xe9   : > { %v709_v13 = vmul.f32 %v1154_v10, %v706_v63  ;;  %v1570_v14 = vpop.eup %1155  ;;  %vm714_vm8 = vweird.f32 %v1154_v10  ;;  %v689_v52 = vsel %vm1615_vm14, %v1552_v60, %v685_v34  ;;  %v677_v60 = vand.u32 2147483648, %v1556_v62 }
  0xea   : > { %v1158_v19 = vpop.eup %1157  ;;  %v667_v31 = vmul.f32 %v1570_v14, %v1556_v62  ;;  %vm715_vm12 = vmor %vm713_vm11, %vm714_vm8  ;;  %v694_v58 = vsel %vm691_vm2, %v693_v47, %v689_v52  ;;  %vm672_vm6 = vweird.f32 %v1570_v14 }
  0xeb   : > { %v710_v22 = vsub.f32 1.0, %v709_v13  ;;  %v724_v26 = vmul.f32 %v1158_v19, %v1560_v3  ;;  %vm729_vm13 = vweird.f32 %v1158_v19  ;;  %vm673_vm4 = vmor %vm671_vm5, %vm672_vm6  ;;  %v678_v2 = vor.u32 1.1754944e-38, %v677_v60 }
  0xec   : > { %v668_v48 = vsub.f32 1.0, %v667_v31  ;;  %vm730_vm1 = vmor %vm728_vm0, %vm729_vm13 }
  0xed   : > { %v711_v28 = vmul.f32 %v1154_v10, %v710_v22  ;;  %v725_v32 = vsub.f32 1.0, %v724_v26 }
  0xee   : > { %v669_v59 = vmul.f32 %v1570_v14, %v668_v48 }
  0xef   : > { %v712_v35 = vadd.f32 %v1154_v10, %v711_v28  ;;  %v726_v38 = vmul.f32 %v1158_v19, %v725_v32 }
  0xf0   : > { %v670_v0 = vadd.f32 %v1570_v14, %v669_v59 }
  0xf1   : > { %v716_v43 = vsel %vm715_vm12, %v1154_v10, %v712_v35  ;;  %v727_v46 = vadd.f32 %v1158_v19, %v726_v38 }
  0xf2   : > { %v721_v45 = vsel %vm718_vm15, %v720_v37, %v716_v43  ;;  %v674_v3 = vsel %vm673_vm4, %v1570_v14, %v670_v0 }
  0xf3   : > { %v738_v51 = vmul.f32 %v721_v45, %v649_v40  ;;  %v731_v53 = vsel %vm730_vm1, %v1158_v19, %v727_v46  ;;  %v679_v5 = vsel %vm676_vm7, %v678_v2, %v674_v3 }
  0xf4   : > { %v736_v55 = vsel %vm733_vm3, %v735_v49, %v731_v53 }
  0xf5   : > { %v739_v56 = vmul.f32 %v738_v51, %v244_v50  ;;  %v740_v57 = vmul.f32 %v736_v55, %v664_v54 }
  0xf7   : > { %v741_v61 = vmul.f32 %v740_v57, %v694_v58 }
  0xf9   : > { %v742_v63 = vadd.f32 %v741_v61, %v739_v56 }
  0xfb   : > { %1159 = vtanh.f32 %v742_v63  ;;  %745 = vst [vmem:[#allocation3] sm:$0xff] %v742_v63 }
 0x101   : > { %v1160_v4 = vpop.eup %1159 }
 0x102   : > { %v744_v6 = vmul.f32 %v1160_v4, %v679_v5 }
 0x104   : > { %746 = vst [vmem:[#allocation2] sm:$0xff] %v744_v6 }
 0x105   : > { %747 = vst [vmem:[%s1237_s28] sm:$0xff] %v744_v6 }
 0x106 PF: > { %s13_s14 = sadd.s32 1, %s1183_s14   ;;  %s1660_s12 = smov %s1179_s13 }
 0x107   : > { %p10_p6 = scmp.ge.s32.totalorder %s13_s14, 10   ;;  %s1661_s13 = smov %s1663_s15 }
 0x109   :  { %12 = sbr.rel (!%p10_p6) target bundleno = 2 (0x2), region = 69 }

// kernel: run.13
= control target key start
LH: loop header
LB: loop body
LE: loop exit
PB: predicated region body
PF: predicated region fallthrough
CT: control target
= control target key end

     0   :  { %s480_s1 = inlined_call_operand.vmem [shape: bf16[128,128], index: 1, kind: input, shape index: {}]   ;;  %s481_s2 = inlined_call_operand.vmem [shape: f32[1,128], index: 2, kind: input, shape index: {}]   ;;  %s482_s3 = inlined_call_operand.vmem [shape: bf16[128,128], index: 3, kind: input, shape index: {}]   ;;  %s483_s0 = inlined_call_operand.vmem [shape: f32[64,128], index: 0, kind: input, shape index: {}]   ;;  %s484_s4 = inlined_call_operand.vmem [shape: f32[1,128], index: 4, kind: input, shape index: {}]   ;;  %s485_s5 = inlined_call_operand.vmem [shape: f32[64,128], index: 5, kind: output, shape index: {}]  }
   0x1   :  { %v321_v0 = vld [vmem:[%s480_s1 + $0x38] sm:$0xff]  ;;  %v320_v1 = vld [vmem:[%s480_s1 + $0x30] sm:$0xff]  ;;  %v319_v2 = vld [vmem:[%s480_s1 + $0x28] sm:$0xff] }
   0x2   :  { %100 = vmatpush.bf16.msra.mxu0 %v321_v0  ;;  %330 = vmatpush.bf16.msra.mxu2 %v321_v0  ;;  %v318_v3 = vld [vmem:[%s480_s1 + $0x20] sm:$0xff]  ;;  %v317_v4 = vld [vmem:[%s480_s1 + $0x18] sm:$0xff]  ;;  %v316_v6 = vld [vmem:[%s480_s1 + $0x10] sm:$0xff] }
   0x3   :  { %v329_v5 = vld [vmem:[%s482_s3 + $0x38] sm:$0xff]  ;;  %v328_v7 = vld [vmem:[%s482_s3 + $0x30] sm:$0xff]  ;;  %v315_v8 = vld [vmem:[%s480_s1 + $0x8] sm:$0xff] }
   0x4   :  { %209 = vmatpush.bf16.msra.mxu1 %v329_v5  ;;  %338 = vmatpush.bf16.msra.mxu3 %v329_v5  ;;  %v327_v9 = vld [vmem:[%s482_s3 + $0x28] sm:$0xff]  ;;  %v314_v10 = vld [vmem:[%s480_s1] sm:$0xff]  ;;  %v22_v18 = vld [vmem:[%s483_s0 + $0x10] sm:$0xff] }
   0x5   :  { %v20_v11 = vld [vmem:[%s483_s0] sm:$0xff]  ;;  %v21_v12 = vld [vmem:[%s483_s0 + $0x8] sm:$0xff]  ;;  %v23_v19 = vld [vmem:[%s483_s0 + $0x18] sm:$0xff] }
   0x6   :  { %101 = vmatpush.bf16.msra.mxu0 %v320_v1  ;;  %331 = vmatpush.bf16.msra.mxu2 %v320_v1  ;;  %v24_v13 = vld [vmem:[%s483_s0 + $0x20] sm:$0xff]  ;;  %v25_v14 = vld [vmem:[%s483_s0 + $0x28] sm:$0xff]  ;;  %v28_v16 = vpack.c.bf16 %v21_v12, %v20_v11  ;;  %v26_v20 = vld [vmem:[%s483_s0 + $0x30] sm:$0xff]  ;;  %v29_v22 = vpack.c.bf16 %v23_v19, %v22_v18 }
   0x7   :  { %v326_v15 = vld [vmem:[%s482_s3 + $0x20] sm:$0xff]  ;;  %v30_v17 = vpack.c.bf16 %v25_v14, %v24_v13  ;;  %v27_v21 = vld [vmem:[%s483_s0 + $0x38] sm:$0xff]  ;;  %v324_v25 = vld [vmem:[%s482_s3 + $0x10] sm:$0xff] }
   0x8   :  { %210 = vmatpush.bf16.msra.mxu1 %v328_v7  ;;  %339 = vmatpush.bf16.msra.mxu3 %v328_v7  ;;  %v31_v23 = vpack.c.bf16 %v27_v21, %v26_v20  ;;  %v325_v24 = vld [vmem:[%s482_s3 + $0x18] sm:$0xff]  ;;  %v323_v26 = vld [vmem:[%s482_s3 + $0x8] sm:$0xff]  ;;  %v322_v27 = vld [vmem:[%s482_s3] sm:$0xff] }
   0x9   :  { %v346_v29 = vld [vmem:[%s481_s2] ss:$0 sm:$0xff] }
   0xa   :  { %102 = vmatpush.bf16.msra.mxu0 %v319_v2  ;;  %332 = vmatpush.bf16.msra.mxu2 %v319_v2  ;;  %v347_v57 = vld [vmem:[%s484_s4] ss:$0 sm:$0xff] }
   0xc   :  { %211 = vmatpush.bf16.msra.mxu1 %v327_v9  ;;  %340 = vmatpush.bf16.msra.mxu3 %v327_v9 }
   0xe   :  { %103 = vmatpush.bf16.msra.mxu0 %v318_v3  ;;  %333 = vmatpush.bf16.msra.mxu2 %v318_v3 }
  0x10   :  { %212 = vmatpush.bf16.msra.mxu1 %v326_v15  ;;  %341 = vmatpush.bf16.msra.mxu3 %v326_v15 }
  0x12   :  { %104 = vmatpush.bf16.msra.mxu0 %v317_v4  ;;  %334 = vmatpush.bf16.msra.mxu2 %v317_v4 }
  0x14   :  { %213 = vmatpush.bf16.msra.mxu1 %v325_v24  ;;  %342 = vmatpush.bf16.msra.mxu3 %v325_v24 }
  0x16   :  { %105 = vmatpush.bf16.msra.mxu0 %v316_v6  ;;  %335 = vmatpush.bf16.msra.mxu2 %v316_v6 }
  0x18   :  { %214 = vmatpush.bf16.msra.mxu1 %v324_v25  ;;  %343 = vmatpush.bf16.msra.mxu3 %v324_v25 }
  0x1a   :  { %106 = vmatpush.bf16.msra.mxu0 %v315_v8  ;;  %336 = vmatpush.bf16.msra.mxu2 %v315_v8 }
  0x1c   :  { %215 = vmatpush.bf16.msra.mxu1 %v323_v26  ;;  %344 = vmatpush.bf16.msra.mxu3 %v323_v26 }
  0x1e   :  { %107 = vmatpush.bf16.msra.mxu0 %v314_v10  ;;  %337 = vmatpush.bf16.msra.mxu2 %v314_v10 }
  0x20   :  { %216 = vmatpush.bf16.msra.mxu1 %v322_v27  ;;  %345 = vmatpush.bf16.msra.mxu3 %v322_v27 }
  0x21   :  { %108 = vmatmul.bf16.vlgmr.msra.gmra.mxu0 %v28_v16  ;;  %118 = vmatmul.bf16.vlgmr.msra.gmra.mxu2 %v30_v17 }
  0x31   :  { %113 = vmatmul.bf16.gmra.mxu0 %v29_v22  ;;  %123 = vmatmul.bf16.gmra.mxu2 %v31_v23 }
  0x9e   :  { %v109_v28 = vpop.f32.mrf.mxu0 }
  0x9f   :  { %v110_v30 = vadd.f32 %v346_v29, %v109_v28 }
  0xa1   :  { %v129_v33 = vmax.f32 %v110_v30, 0.0 }
  0xa4   :  { %v119_v31 = vpop.f32.mrf.mxu2 }
  0xa5   :  { %v120_v36 = vadd.f32 %v346_v29, %v119_v31 }
  0xa6   :  { %v111_v32 = vpop.f32.mrf.mxu0 }
  0xa7   :  { %v112_v34 = vadd.f32 %v346_v29, %v111_v32  ;;  %v133_v41 = vmax.f32 %v120_v36, 0.0 }
  0xa9   :  { %v130_v35 = vmax.f32 %v112_v34, 0.0 }
  0xab   :  { %v137_v37 = vpack.c.bf16 %v130_v35, %v129_v33 }
  0xac   :  { %v121_v38 = vpop.f32.mrf.mxu2 }
  0xad   :  { %v122_v39 = vadd.f32 %v346_v29, %v121_v38  ;;  %217 = vmatmul.bf16.vlgmr.msra.gmra.mxu1 %v137_v37 }
  0xae   :  { %v114_v40 = vpop.f32.mrf.mxu0 }
  0xaf   :  { %v134_v42 = vmax.f32 %v122_v39, 0.0  ;;  %v115_v44 = vadd.f32 %v346_v29, %v114_v40 }
  0xb1   :  { %v139_v43 = vpack.c.bf16 %v134_v42, %v133_v41  ;;  %v131_v47 = vmax.f32 %v115_v44, 0.0 }
  0xb3   :  { %227 = vmatmul.bf16.vlgmr.msra.gmra.mxu3 %v139_v43 }
  0xb4   :  { %v124_v45 = vpop.f32.mrf.mxu2 }
  0xb5   :  { %v125_v50 = vadd.f32 %v346_v29, %v124_v45 }
  0xb6   :  { %v116_v46 = vpop.f32.mrf.mxu0 }
  0xb7   :  { %v117_v48 = vadd.f32 %v346_v29, %v116_v46  ;;  %v135_v54 = vmax.f32 %v125_v50, 0.0 }
  0xb9   :  { %v132_v49 = vmax.f32 %v117_v48, 0.0 }
  0xbb   :  { %v138_v51 = vpack.c.bf16 %v132_v49, %v131_v47 }
  0xbc   :  { %v126_v52 = vpop.f32.mrf.mxu2 }
  0xbd   :  { %v127_v53 = vadd.f32 %v346_v29, %v126_v52  ;;  %222 = vmatmul.bf16.gmra.mxu1 %v138_v51 }
  0xbf   :  { %v136_v55 = vmax.f32 %v127_v53, 0.0 }
  0xc1   :  { %v140_v56 = vpack.c.bf16 %v136_v55, %v135_v54 }
  0xc3   :  { %232 = vmatmul.bf16.gmra.mxu3 %v140_v56 }
 0x12a   :  { %v218_v58 = vpop.f32.mrf.mxu1 }
 0x12b   :  { %v219_v59 = vadd.f32 %v347_v57, %v218_v58 }
 0x12d   :  { %238 = vst [vmem:[%s485_s5] sm:$0xff] %v219_v59 }
 0x132   :  { %v220_v60 = vpop.f32.mrf.mxu1 }
 0x133   :  { %v221_v61 = vadd.f32 %v347_v57, %v220_v60 }
 0x135   :  { %239 = vst [vmem:[%s485_s5 + $0x8] sm:$0xff] %v221_v61 }
 0x136   :  { %v228_v62 = vpop.f32.mrf.mxu3 }
 0x137   :  { %v229_v63 = vadd.f32 %v347_v57, %v228_v62 }
 0x139   :  { %242 = vst [vmem:[%s485_s5 + $0x20] sm:$0xff] %v229_v63 }
 0x13a   :  { %v223_v0 = vpop.f32.mrf.mxu1 }
 0x13b   :  { %v224_v1 = vadd.f32 %v347_v57, %v223_v0 }
 0x13d   :  { %240 = vst [vmem:[%s485_s5 + $0x10] sm:$0xff] %v224_v1 }
 0x13e   :  { %v230_v2 = vpop.f32.mrf.mxu3 }
 0x13f   :  { %v231_v3 = vadd.f32 %v347_v57, %v230_v2 }
 0x141   :  { %243 = vst [vmem:[%s485_s5 + $0x28] sm:$0xff] %v231_v3 }
 0x142   :  { %v225_v4 = vpop.f32.mrf.mxu1 }
 0x143   :  { %v226_v5 = vadd.f32 %v347_v57, %v225_v4 }
 0x145   :  { %241 = vst [vmem:[%s485_s5 + $0x18] sm:$0xff] %v226_v5 }
 0x146   :  { %v233_v6 = vpop.f32.mrf.mxu3 }
 0x147   :  { %v234_v7 = vadd.f32 %v347_v57, %v233_v6 }
 0x149   :  { %244 = vst [vmem:[%s485_s5 + $0x30] sm:$0xff] %v234_v7 }
 0x14e   :  { %v235_v8 = vpop.f32.mrf.mxu3 }
 0x14f   :  { %v236_v9 = vadd.f32 %v347_v57, %v235_v8 }
 0x151   :  { %245 = vst [vmem:[%s485_s5 + $0x38] sm:$0xff] %v236_v9 }

</bundles_post_ra>
